<compile_context>
chip_gen: v6e
topology: v6e:2x2x1
jax: 0.10.0
libtpu: 0.0.40
codegen_flags: <defaults>
</compile_context>

<pallas_src>
import functools

import jax
import jax.numpy as jnp
from jax.experimental import pallas as pl
from jax.experimental.pallas import tpu as pltpu


def gat_fused_kernel(*refs, layer_meta, alpha, mxu_bf16, approx_recip, out_pad):
    """Whole-network GAT forward (all layers, all heads) in one kernel.

    refs = (x_ref, <per-layer refs...>, out_ref)
    per-layer refs: w_aug, bias_tiled, diag_mask, [sel, bd_mask if H > 1]

    x_ref:      (N, F0)                               node features (f32)
    w_aug:      (D_in, H*D_out + 2*H*N)               [W | Wa1-blocks | Wa2-blocks]
    bias_tiled: (N, H*N)                              0 / -9e15 adjacency bias, tiled per head
    diag_mask:  (N, H*N)                              tile(eye(N), (1,H))
    sel:        (H, H*N)                              0/1 head-block selector
    bd_mask:    (H*N, H*D_out)                        block-diagonal ones
    out_ref:    (N, H_last*D_last + out_pad)
    """
    x_ref = refs[0]
    out_ref = refs[-1]
    layer_refs = refs[1:-1]

    x = x_ref[...]                                    # (N, F0) f32
    N = x.shape[0]
    n_layers = len(layer_meta)
    mxu_dtype = jnp.bfloat16 if mxu_bf16 else jnp.float32

    idx = 0
    for li, (H, D_out) in enumerate(layer_meta):
        w_aug_ref = layer_refs[idx]
        biasT_ref = layer_refs[idx + 1]
        diag_ref = layer_refs[idx + 2]
        idx += 3
        if H > 1:
            sel_ref = layer_refs[idx]
            bd_ref = layer_refs[idx + 1]
            idx += 2

        HD = H * D_out
        HN = H * N

        # --- one MXU projection per layer: features + both logit slabs -------
        y = jnp.dot(x.astype(mxu_dtype), w_aug_ref[...],
                    preferred_element_type=jnp.float32)          # (N, HD + 2*HN)
        h_all = y[:, :HD]                                        # (N, H*D_out) head-major
        c1_slab = y[:, HD:HD + HN]                               # (N, H*N): x[p]·(W_h a1_h)
        c2_pre = y[:, HD + HN:HD + 2 * HN]                       # (N, H*N): x[p]·(W_h a2_h)

        # c2 logits as a single (1, H*N) row: pick the within-block diagonal
        # entries and fold the row (sublane) axis.
        c2_flat = jnp.sum(c2_pre * diag_ref[...], axis=0, keepdims=True)

        # --- head-stacked attention slab, elementwise done once --------------
        # e[p, h*N+q] = LeakyReLU(h_h[p]·a1_h + h_h[q]·a2_h)
        e = c1_slab + c2_flat
        e = jnp.where(e > 0, e, alpha * e)                       # LeakyReLU(alpha)
        att = e + biasT_ref[...]                                 # adjacency mask bias

        # segmented (per-head block) softmax over dim=1
        m_parts = [jnp.max(att[:, h * N:(h + 1) * N], axis=1, keepdims=True)
                   for h in range(H)]
        m_all = m_parts[0] if H == 1 else jnp.concatenate(m_parts, axis=1)   # (N, H)
        if H == 1:
            m_slab = m_all                                       # (N,1) broadcasts
        else:
            m_slab = jnp.dot(m_all, sel_ref[...],
                             preferred_element_type=jnp.float32)  # (N, H*N)
        p = jnp.exp(att - m_slab)

        s_parts = [jnp.sum(p[:, h * N:(h + 1) * N], axis=1, keepdims=True)
                   for h in range(H)]
        s_all = s_parts[0] if H == 1 else jnp.concatenate(s_parts, axis=1)   # (N, H)
        inv_all = (pl.reciprocal(s_all, approx=True) if approx_recip
                   else 1.0 / s_all)
        if H == 1:
            att_n = p * inv_all
        else:
            att_n = p * jnp.dot(inv_all, sel_ref[...],
                                preferred_element_type=jnp.float32)

        # TODO(synk): F.dropout(attention, 0.6) in training mode is not
        # reproduced (eval-mode / deterministic no-op here).

        # --- ONE aggregation matmul for all heads (block-diagonal RHS) -------
        if H == 1:
            B = h_all                                            # (N, D_out)
        else:
            B = jnp.concatenate([h_all] * H, axis=0) * bd_ref[...]   # (H*N, H*D_out)
        x = jnp.dot(att_n.astype(mxu_dtype), B.astype(mxu_dtype),
                    preferred_element_type=jnp.float32)          # (N, H*D_out)

        if li < n_layers - 1:
            # ELU with a stable expm1 (exp(x)-1 for |x| not tiny, 3rd-order
            # Taylor near 0) — avoids both the exp(x)-1 cancellation flagged in
            # review and reliance on an expm1 lowering.
            xn = jnp.minimum(x, 0.0)
            em1 = jnp.where(xn < -0.0078125,
                            jnp.exp(xn) - 1.0,
                            xn + 0.5 * xn * xn * (1.0 + xn * (1.0 / 3.0)))
            x = jnp.where(x > 0, x, em1)

    # lane-dense final store (pad to a 128-lane multiple; wrapper slices back)
    if out_pad:
        x = jnp.concatenate([x, jnp.zeros((x.shape[0], out_pad), x.dtype)], axis=1)
    out_ref[...] = x


def build_layer_weights(params, N, *, mxu_dtype):
    """Fold attention vectors into the projection weights.

    params: list of (W: (H, D_in, D_out), a: (H, 2, D_out)).
    Returns per-layer W_aug = [W_all | Wa1 N-block-broadcast | Wa2 N-block-broadcast]
    plus static (H, D_out) metadata.
    """
    w_augs, meta = [], []
    for W, a in params:
        H, D_in, D_out = W.shape
        # head-major column layout: column h*D_out + j == W[h, :, j]
        W_all = jnp.transpose(W, (1, 0, 2)).reshape(D_in, H * D_out)
        Wa1 = jnp.einsum('hio,ho->ih', W, a[:, 0, :])            # (D_in, H)
        Wa2 = jnp.einsum('hio,ho->ih', W, a[:, 1, :])            # (D_in, H)
        # broadcast each logit column across an N-wide head block so the c1/c2
        # slabs come straight out of the projection matmul
        Wa1_blk = jnp.repeat(Wa1, N, axis=1)                     # (D_in, H*N)
        Wa2_blk = jnp.repeat(Wa2, N, axis=1)                     # (D_in, H*N)
        w_augs.append(jnp.concatenate([W_all, Wa1_blk, Wa2_blk],
                                      axis=1).astype(mxu_dtype))
        meta.append((H, D_out))
    return w_augs, tuple(meta)


def gat_forward(params, x, adj, *, alpha=0.2, mxu_bf16=True, approx_recip=True):
    """Full GAT forward (all layers, all heads) in one pallas_call."""
    N = x.shape[0]
    mxu_dtype = jnp.bfloat16 if mxu_bf16 else jnp.float32
    w_augs, meta = build_layer_weights(params, N, mxu_dtype=mxu_dtype)

    # adjacency bias precomputed once; head-tiled constants built per layer
    bias = jnp.where(adj > 0, 0.0, -9e15).astype(jnp.float32)    # (N, N)
    eye_n = jnp.eye(N, dtype=jnp.float32)

    flat_inputs = []
    for (H, D_out), w_aug in zip(meta, w_augs):
        flat_inputs.append(w_aug)                                # (D_in, HD + 2HN)
        flat_inputs.append(jnp.tile(bias, (1, H)))               # (N, H*N)
        flat_inputs.append(jnp.tile(eye_n, (1, H)))              # diag mask (N, H*N)
        if H > 1:
            sel = jnp.repeat(jnp.eye(H, dtype=jnp.float32), N, axis=1)       # (H, H*N)
            bd = jnp.kron(jnp.eye(H, dtype=jnp.float32),
                          jnp.ones((N, D_out), jnp.float32))                 # (H*N, H*D_out)
            flat_inputs.append(sel)
            flat_inputs.append(bd)

    H_last, D_last = meta[-1]
    out_dim = H_last * D_last
    out_pad = (-out_dim) % 128                                   # lane-dense store width
    out_w = out_dim + out_pad

    kernel = functools.partial(gat_fused_kernel, layer_meta=meta, alpha=alpha,
                               mxu_bf16=mxu_bf16, approx_recip=approx_recip,
                               out_pad=out_pad)
    n_in = 1 + len(flat_inputs)
    vmem_spec = lambda: pl.BlockSpec(memory_space=pltpu.MemorySpace.VMEM)

    res = pl.pallas_call(
        kernel,
        out_shape=jax.ShapeDtypeStruct((N, out_w), jnp.float32),
        in_specs=[vmem_spec() for _ in range(n_in)],
        out_specs=vmem_spec(),
    )(x.astype(jnp.float32), *flat_inputs)
    return res[:, :out_dim]


def init_gat_params(key, input_dim, hidden_dim, output_dim, num_layers, num_heads):
    """Deterministic xavier_uniform(gain=1.414) init matching GAT.__init__ shapes."""
    configs = [(input_dim, hidden_dim, num_heads)]
    for _ in range(num_layers - 2):
        configs.append((hidden_dim * num_heads, hidden_dim, num_heads))
        configs.append((hidden_dim * num_heads, output_dim, 1))
    configs = configs[:num_layers]  # forward only uses the first num_layers layers

    gain = 1.414
    params = []
    for (din, dout, nh) in configs:
        key, kw, ka = jax.random.split(key, 3)
        bw = gain * (6.0 / (din + dout)) ** 0.5
        W = jax.random.uniform(kw, (nh, din, dout), jnp.float32, -bw, bw)
        ba = gain * (6.0 / (2 * dout + 1)) ** 0.5
        # torch 'a' is (2*dout, 1); stored here as (nh, 2, dout): [a1; a2]
        a = jax.random.uniform(ka, (nh, 2, dout), jnp.float32, -ba, ba)
        params.append((W, a))
    return params


if __name__ == "__main__":
    key = jax.random.PRNGKey(0)
    N = 16            # number of graph nodes
    input_dim = 8
    hidden_dim = 16
    output_dim = 8
    num_layers = 3
    num_heads = 4

    kx, kadj, kp = jax.random.split(key, 3)
    x = jax.random.normal(kx, (N, input_dim), jnp.float32)
    adj = (jax.random.uniform(kadj, (N, N)) < 0.4).astype(jnp.float32)
    adj = jnp.maximum(adj, adj.T)                              # symmetric
    adj = adj.at[jnp.arange(N), jnp.arange(N)].set(1.0)        # self loops

    params = init_gat_params(kp, input_dim, hidden_dim, output_dim,
                             num_layers, num_heads)

    fwd = jax.jit(lambda x_, adj_: gat_forward(params, x_, adj_))
    out = fwd(x, adj)
    jax.block_until_ready(out)

    assert out.shape == (N, output_dim), out.shape
    assert bool(jnp.all(jnp.isfinite(out)))
    print("KERNEL_OK")
</pallas_src>

<mosaic_0001>
module attributes {stable_mosaic.version = 11 : i64} {
  func.func @gat_fused_kernel(%arg0: memref<16x8xf32, #tpu.memory_space<vmem>>, %arg1: memref<8x192xbf16, #tpu.memory_space<vmem>>, %arg2: memref<16x64xf32, #tpu.memory_space<vmem>>, %arg3: memref<16x64xf32, #tpu.memory_space<vmem>>, %arg4: memref<4x64xf32, #tpu.memory_space<vmem>>, %arg5: memref<64x64xf32, #tpu.memory_space<vmem>>, %arg6: memref<64x192xbf16, #tpu.memory_space<vmem>>, %arg7: memref<16x64xf32, #tpu.memory_space<vmem>>, %arg8: memref<16x64xf32, #tpu.memory_space<vmem>>, %arg9: memref<4x64xf32, #tpu.memory_space<vmem>>, %arg10: memref<64x64xf32, #tpu.memory_space<vmem>>, %arg11: memref<64x40xbf16, #tpu.memory_space<vmem>>, %arg12: memref<16x16xf32, #tpu.memory_space<vmem>>, %arg13: memref<16x16xf32, #tpu.memory_space<vmem>>, %arg14: memref<16x128xf32, #tpu.memory_space<vmem>>) attributes {dimension_semantics = [], scalar_prefetch = 0 : i64, scratch_operands = 0 : i64, tpu.core_type = #tpu.core_type<tc>} {
    %c0 = arith.constant 0 : index
    %c0_0 = arith.constant 0 : index
    %0 = vector.load %arg0[%c0, %c0_0] : memref<16x8xf32, #tpu.memory_space<vmem>>, vector<16x8xf32>
    %1 = arith.truncf %0 : vector<16x8xf32> to vector<16x8xbf16>
    %c0_1 = arith.constant 0 : index
    %c0_2 = arith.constant 0 : index
    %2 = vector.load %arg1[%c0_1, %c0_2] : memref<8x192xbf16, #tpu.memory_space<vmem>>, vector<8x192xbf16>
    %cst = arith.constant dense<0.000000e+00> : vector<16x192xf32>
    %3 = tpu.matmul %1, %2, %cst {dimension_numbers = #tpu.dot_dimension_numbers<[1], [0], [0], [1], [0, 0, 1, 1], [], []>} : vector<16x8xbf16>, vector<8x192xbf16>, vector<16x192xf32> -> vector<16x192xf32>
    %4 = vector.extract_strided_slice %3 {offsets = [0, 0], sizes = [16, 64], strides = [1, 1]} : vector<16x192xf32> to vector<16x64xf32>
    %5 = vector.extract_strided_slice %3 {offsets = [0, 64], sizes = [16, 64], strides = [1, 1]} : vector<16x192xf32> to vector<16x64xf32>
    %6 = vector.extract_strided_slice %3 {offsets = [0, 128], sizes = [16, 64], strides = [1, 1]} : vector<16x192xf32> to vector<16x64xf32>
    %c0_3 = arith.constant 0 : index
    %c0_4 = arith.constant 0 : index
    %7 = vector.load %arg3[%c0_3, %c0_4] : memref<16x64xf32, #tpu.memory_space<vmem>>, vector<16x64xf32>
    %8 = arith.mulf %6, %7 : vector<16x64xf32>
    %cst_5 = arith.constant dense<0.000000e+00> : vector<64xf32>
    %9 = vector.multi_reduction <add>, %8, %cst_5 [0] : vector<16x64xf32> to vector<64xf32>
    %10 = vector.shape_cast %9 : vector<64xf32> to vector<1x64xf32>
    %11 = vector.broadcast %10 : vector<1x64xf32> to vector<16x64xf32>
    %12 = arith.addf %5, %11 : vector<16x64xf32>
    %cst_6 = arith.constant 0.000000e+00 : f32
    %13 = vector.broadcast %cst_6 : f32 to vector<16x64xf32>
    %14 = arith.cmpf ogt, %12, %13 : vector<16x64xf32>
    %cst_7 = arith.constant 2.000000e-01 : f32
    %15 = vector.broadcast %cst_7 : f32 to vector<16x64xf32>
    %16 = arith.mulf %15, %12 : vector<16x64xf32>
    %17 = arith.select %14, %12, %16 : vector<16x64xi1>, vector<16x64xf32>
    %c0_8 = arith.constant 0 : index
    %c0_9 = arith.constant 0 : index
    %18 = vector.load %arg2[%c0_8, %c0_9] : memref<16x64xf32, #tpu.memory_space<vmem>>, vector<16x64xf32>
    %19 = arith.addf %17, %18 : vector<16x64xf32>
    %20 = vector.extract_strided_slice %19 {offsets = [0, 0], sizes = [16, 16], strides = [1, 1]} : vector<16x64xf32> to vector<16x16xf32>
    %cst_10 = arith.constant dense<0xFF800000> : vector<16xf32>
    %21 = vector.multi_reduction <maximumf>, %20, %cst_10 [1] : vector<16x16xf32> to vector<16xf32>
    %22 = vector.shape_cast %21 : vector<16xf32> to vector<16x1xf32>
    %23 = vector.extract_strided_slice %19 {offsets = [0, 16], sizes = [16, 16], strides = [1, 1]} : vector<16x64xf32> to vector<16x16xf32>
    %cst_11 = arith.constant dense<0xFF800000> : vector<16xf32>
    %24 = vector.multi_reduction <maximumf>, %23, %cst_11 [1] : vector<16x16xf32> to vector<16xf32>
    %25 = vector.shape_cast %24 : vector<16xf32> to vector<16x1xf32>
    %26 = vector.extract_strided_slice %19 {offsets = [0, 32], sizes = [16, 16], strides = [1, 1]} : vector<16x64xf32> to vector<16x16xf32>
    %cst_12 = arith.constant dense<0xFF800000> : vector<16xf32>
    %27 = vector.multi_reduction <maximumf>, %26, %cst_12 [1] : vector<16x16xf32> to vector<16xf32>
    %28 = vector.shape_cast %27 : vector<16xf32> to vector<16x1xf32>
    %29 = vector.extract_strided_slice %19 {offsets = [0, 48], sizes = [16, 16], strides = [1, 1]} : vector<16x64xf32> to vector<16x16xf32>
    %cst_13 = arith.constant dense<0xFF800000> : vector<16xf32>
    %30 = vector.multi_reduction <maximumf>, %29, %cst_13 [1] : vector<16x16xf32> to vector<16xf32>
    %31 = vector.shape_cast %30 : vector<16xf32> to vector<16x1xf32>
    %32 = tpu.concatenate %22, %25, %28, %31 in 1 : vector<16x1xf32>, vector<16x1xf32>, vector<16x1xf32>, vector<16x1xf32> -> vector<16x4xf32>
    %c0_14 = arith.constant 0 : index
    %c0_15 = arith.constant 0 : index
    %33 = vector.load %arg4[%c0_14, %c0_15] : memref<4x64xf32, #tpu.memory_space<vmem>>, vector<4x64xf32>
    %cst_16 = arith.constant dense<0.000000e+00> : vector<16x64xf32>
    %34 = tpu.matmul %32, %33, %cst_16 {dimension_numbers = #tpu.dot_dimension_numbers<[1], [0], [0], [1], [0, 0, 1, 1], [], []>} : vector<16x4xf32>, vector<4x64xf32>, vector<16x64xf32> -> vector<16x64xf32>
    %35 = arith.subf %19, %34 : vector<16x64xf32>
    %36 = math.exp %35 : vector<16x64xf32>
    %37 = vector.extract_strided_slice %36 {offsets = [0, 0], sizes = [16, 16], strides = [1, 1]} : vector<16x64xf32> to vector<16x16xf32>
    %cst_17 = arith.constant dense<0.000000e+00> : vector<16xf32>
    %38 = vector.multi_reduction <add>, %37, %cst_17 [1] : vector<16x16xf32> to vector<16xf32>
    %39 = vector.shape_cast %38 : vector<16xf32> to vector<16x1xf32>
    %40 = vector.extract_strided_slice %36 {offsets = [0, 16], sizes = [16, 16], strides = [1, 1]} : vector<16x64xf32> to vector<16x16xf32>
    %cst_18 = arith.constant dense<0.000000e+00> : vector<16xf32>
    %41 = vector.multi_reduction <add>, %40, %cst_18 [1] : vector<16x16xf32> to vector<16xf32>
    %42 = vector.shape_cast %41 : vector<16xf32> to vector<16x1xf32>
    %43 = vector.extract_strided_slice %36 {offsets = [0, 32], sizes = [16, 16], strides = [1, 1]} : vector<16x64xf32> to vector<16x16xf32>
    %cst_19 = arith.constant dense<0.000000e+00> : vector<16xf32>
    %44 = vector.multi_reduction <add>, %43, %cst_19 [1] : vector<16x16xf32> to vector<16xf32>
    %45 = vector.shape_cast %44 : vector<16xf32> to vector<16x1xf32>
    %46 = vector.extract_strided_slice %36 {offsets = [0, 48], sizes = [16, 16], strides = [1, 1]} : vector<16x64xf32> to vector<16x16xf32>
    %cst_20 = arith.constant dense<0.000000e+00> : vector<16xf32>
    %47 = vector.multi_reduction <add>, %46, %cst_20 [1] : vector<16x16xf32> to vector<16xf32>
    %48 = vector.shape_cast %47 : vector<16xf32> to vector<16x1xf32>
    %49 = tpu.concatenate %39, %42, %45, %48 in 1 : vector<16x1xf32>, vector<16x1xf32>, vector<16x1xf32>, vector<16x1xf32> -> vector<16x4xf32>
    %50 = tpu.reciprocal %49 {approx = true} : vector<16x4xf32> -> vector<16x4xf32>
    %c0_21 = arith.constant 0 : index
    %c0_22 = arith.constant 0 : index
    %51 = vector.load %arg4[%c0_21, %c0_22] : memref<4x64xf32, #tpu.memory_space<vmem>>, vector<4x64xf32>
    %cst_23 = arith.constant dense<0.000000e+00> : vector<16x64xf32>
    %52 = tpu.matmul %50, %51, %cst_23 {dimension_numbers = #tpu.dot_dimension_numbers<[1], [0], [0], [1], [0, 0, 1, 1], [], []>} : vector<16x4xf32>, vector<4x64xf32>, vector<16x64xf32> -> vector<16x64xf32>
    %53 = arith.mulf %36, %52 : vector<16x64xf32>
    %54 = tpu.concatenate %4, %4, %4, %4 in 0 : vector<16x64xf32>, vector<16x64xf32>, vector<16x64xf32>, vector<16x64xf32> -> vector<64x64xf32>
    %c0_24 = arith.constant 0 : index
    %c0_25 = arith.constant 0 : index
    %55 = vector.load %arg5[%c0_24, %c0_25] : memref<64x64xf32, #tpu.memory_space<vmem>>, vector<64x64xf32>
    %56 = arith.mulf %54, %55 : vector<64x64xf32>
    %57 = arith.truncf %53 : vector<16x64xf32> to vector<16x64xbf16>
    %58 = arith.truncf %56 : vector<64x64xf32> to vector<64x64xbf16>
    %cst_26 = arith.constant dense<0.000000e+00> : vector<16x64xf32>
    %59 = tpu.matmul %57, %58, %cst_26 {dimension_numbers = #tpu.dot_dimension_numbers<[1], [0], [0], [1], [0, 0, 1, 1], [], []>} : vector<16x64xbf16>, vector<64x64xbf16>, vector<16x64xf32> -> vector<16x64xf32>
    %cst_27 = arith.constant 0.000000e+00 : f32
    %60 = vector.broadcast %cst_27 : f32 to vector<16x64xf32>
    %61 = arith.minimumf %59, %60 : vector<16x64xf32>
    %cst_28 = arith.constant -7.812500e-03 : f32
    %62 = vector.broadcast %cst_28 : f32 to vector<16x64xf32>
    %63 = arith.cmpf olt, %61, %62 : vector<16x64xf32>
    %64 = math.exp %61 : vector<16x64xf32>
    %cst_29 = arith.constant 1.000000e+00 : f32
    %65 = vector.broadcast %cst_29 : f32 to vector<16x64xf32>
    %66 = arith.subf %64, %65 : vector<16x64xf32>
    %cst_30 = arith.constant 5.000000e-01 : f32
    %67 = vector.broadcast %cst_30 : f32 to vector<16x64xf32>
    %68 = arith.mulf %67, %61 : vector<16x64xf32>
    %69 = arith.mulf %68, %61 : vector<16x64xf32>
    %cst_31 = arith.constant 0.333333343 : f32
    %70 = vector.broadcast %cst_31 : f32 to vector<16x64xf32>
    %71 = arith.mulf %61, %70 : vector<16x64xf32>
    %cst_32 = arith.constant 1.000000e+00 : f32
    %72 = vector.broadcast %cst_32 : f32 to vector<16x64xf32>
    %73 = arith.addf %72, %71 : vector<16x64xf32>
    %74 = arith.mulf %69, %73 : vector<16x64xf32>
    %75 = arith.addf %61, %74 : vector<16x64xf32>
    %76 = arith.select %63, %66, %75 : vector<16x64xi1>, vector<16x64xf32>
    %cst_33 = arith.constant 0.000000e+00 : f32
    %77 = vector.broadcast %cst_33 : f32 to vector<16x64xf32>
    %78 = arith.cmpf ogt, %59, %77 : vector<16x64xf32>
    %79 = arith.select %78, %59, %76 : vector<16x64xi1>, vector<16x64xf32>
    %80 = arith.truncf %79 : vector<16x64xf32> to vector<16x64xbf16>
    %c0_34 = arith.constant 0 : index
    %c0_35 = arith.constant 0 : index
    %81 = vector.load %arg6[%c0_34, %c0_35] : memref<64x192xbf16, #tpu.memory_space<vmem>>, vector<64x192xbf16>
    %cst_36 = arith.constant dense<0.000000e+00> : vector<16x192xf32>
    %82 = tpu.matmul %80, %81, %cst_36 {dimension_numbers = #tpu.dot_dimension_numbers<[1], [0], [0], [1], [0, 0, 1, 1], [], []>} : vector<16x64xbf16>, vector<64x192xbf16>, vector<16x192xf32> -> vector<16x192xf32>
    %83 = vector.extract_strided_slice %82 {offsets = [0, 0], sizes = [16, 64], strides = [1, 1]} : vector<16x192xf32> to vector<16x64xf32>
    %84 = vector.extract_strided_slice %82 {offsets = [0, 64], sizes = [16, 64], strides = [1, 1]} : vector<16x192xf32> to vector<16x64xf32>
    %85 = vector.extract_strided_slice %82 {offsets = [0, 128], sizes = [16, 64], strides = [1, 1]} : vector<16x192xf32> to vector<16x64xf32>
    %c0_37 = arith.constant 0 : index
    %c0_38 = arith.constant 0 : index
    %86 = vector.load %arg8[%c0_37, %c0_38] : memref<16x64xf32, #tpu.memory_space<vmem>>, vector<16x64xf32>
    %87 = arith.mulf %85, %86 : vector<16x64xf32>
    %cst_39 = arith.constant dense<0.000000e+00> : vector<64xf32>
    %88 = vector.multi_reduction <add>, %87, %cst_39 [0] : vector<16x64xf32> to vector<64xf32>
    %89 = vector.shape_cast %88 : vector<64xf32> to vector<1x64xf32>
    %90 = vector.broadcast %89 : vector<1x64xf32> to vector<16x64xf32>
    %91 = arith.addf %84, %90 : vector<16x64xf32>
    %cst_40 = arith.constant 0.000000e+00 : f32
    %92 = vector.broadcast %cst_40 : f32 to vector<16x64xf32>
    %93 = arith.cmpf ogt, %91, %92 : vector<16x64xf32>
    %cst_41 = arith.constant 2.000000e-01 : f32
    %94 = vector.broadcast %cst_41 : f32 to vector<16x64xf32>
    %95 = arith.mulf %94, %91 : vector<16x64xf32>
    %96 = arith.select %93, %91, %95 : vector<16x64xi1>, vector<16x64xf32>
    %c0_42 = arith.constant 0 : index
    %c0_43 = arith.constant 0 : index
    %97 = vector.load %arg7[%c0_42, %c0_43] : memref<16x64xf32, #tpu.memory_space<vmem>>, vector<16x64xf32>
    %98 = arith.addf %96, %97 : vector<16x64xf32>
    %99 = vector.extract_strided_slice %98 {offsets = [0, 0], sizes = [16, 16], strides = [1, 1]} : vector<16x64xf32> to vector<16x16xf32>
    %cst_44 = arith.constant dense<0xFF800000> : vector<16xf32>
    %100 = vector.multi_reduction <maximumf>, %99, %cst_44 [1] : vector<16x16xf32> to vector<16xf32>
    %101 = vector.shape_cast %100 : vector<16xf32> to vector<16x1xf32>
    %102 = vector.extract_strided_slice %98 {offsets = [0, 16], sizes = [16, 16], strides = [1, 1]} : vector<16x64xf32> to vector<16x16xf32>
    %cst_45 = arith.constant dense<0xFF800000> : vector<16xf32>
    %103 = vector.multi_reduction <maximumf>, %102, %cst_45 [1] : vector<16x16xf32> to vector<16xf32>
    %104 = vector.shape_cast %103 : vector<16xf32> to vector<16x1xf32>
    %105 = vector.extract_strided_slice %98 {offsets = [0, 32], sizes = [16, 16], strides = [1, 1]} : vector<16x64xf32> to vector<16x16xf32>
    %cst_46 = arith.constant dense<0xFF800000> : vector<16xf32>
    %106 = vector.multi_reduction <maximumf>, %105, %cst_46 [1] : vector<16x16xf32> to vector<16xf32>
    %107 = vector.shape_cast %106 : vector<16xf32> to vector<16x1xf32>
    %108 = vector.extract_strided_slice %98 {offsets = [0, 48], sizes = [16, 16], strides = [1, 1]} : vector<16x64xf32> to vector<16x16xf32>
    %cst_47 = arith.constant dense<0xFF800000> : vector<16xf32>
    %109 = vector.multi_reduction <maximumf>, %108, %cst_47 [1] : vector<16x16xf32> to vector<16xf32>
    %110 = vector.shape_cast %109 : vector<16xf32> to vector<16x1xf32>
    %111 = tpu.concatenate %101, %104, %107, %110 in 1 : vector<16x1xf32>, vector<16x1xf32>, vector<16x1xf32>, vector<16x1xf32> -> vector<16x4xf32>
    %c0_48 = arith.constant 0 : index
    %c0_49 = arith.constant 0 : index
    %112 = vector.load %arg9[%c0_48, %c0_49] : memref<4x64xf32, #tpu.memory_space<vmem>>, vector<4x64xf32>
    %cst_50 = arith.constant dense<0.000000e+00> : vector<16x64xf32>
    %113 = tpu.matmul %111, %112, %cst_50 {dimension_numbers = #tpu.dot_dimension_numbers<[1], [0], [0], [1], [0, 0, 1, 1], [], []>} : vector<16x4xf32>, vector<4x64xf32>, vector<16x64xf32> -> vector<16x64xf32>
    %114 = arith.subf %98, %113 : vector<16x64xf32>
    %115 = math.exp %114 : vector<16x64xf32>
    %116 = vector.extract_strided_slice %115 {offsets = [0, 0], sizes = [16, 16], strides = [1, 1]} : vector<16x64xf32> to vector<16x16xf32>
    %cst_51 = arith.constant dense<0.000000e+00> : vector<16xf32>
    %117 = vector.multi_reduction <add>, %116, %cst_51 [1] : vector<16x16xf32> to vector<16xf32>
    %118 = vector.shape_cast %117 : vector<16xf32> to vector<16x1xf32>
    %119 = vector.extract_strided_slice %115 {offsets = [0, 16], sizes = [16, 16], strides = [1, 1]} : vector<16x64xf32> to vector<16x16xf32>
    %cst_52 = arith.constant dense<0.000000e+00> : vector<16xf32>
    %120 = vector.multi_reduction <add>, %119, %cst_52 [1] : vector<16x16xf32> to vector<16xf32>
    %121 = vector.shape_cast %120 : vector<16xf32> to vector<16x1xf32>
    %122 = vector.extract_strided_slice %115 {offsets = [0, 32], sizes = [16, 16], strides = [1, 1]} : vector<16x64xf32> to vector<16x16xf32>
    %cst_53 = arith.constant dense<0.000000e+00> : vector<16xf32>
    %123 = vector.multi_reduction <add>, %122, %cst_53 [1] : vector<16x16xf32> to vector<16xf32>
    %124 = vector.shape_cast %123 : vector<16xf32> to vector<16x1xf32>
    %125 = vector.extract_strided_slice %115 {offsets = [0, 48], sizes = [16, 16], strides = [1, 1]} : vector<16x64xf32> to vector<16x16xf32>
    %cst_54 = arith.constant dense<0.000000e+00> : vector<16xf32>
    %126 = vector.multi_reduction <add>, %125, %cst_54 [1] : vector<16x16xf32> to vector<16xf32>
    %127 = vector.shape_cast %126 : vector<16xf32> to vector<16x1xf32>
    %128 = tpu.concatenate %118, %121, %124, %127 in 1 : vector<16x1xf32>, vector<16x1xf32>, vector<16x1xf32>, vector<16x1xf32> -> vector<16x4xf32>
    %129 = tpu.reciprocal %128 {approx = true} : vector<16x4xf32> -> vector<16x4xf32>
    %c0_55 = arith.constant 0 : index
    %c0_56 = arith.constant 0 : index
    %130 = vector.load %arg9[%c0_55, %c0_56] : memref<4x64xf32, #tpu.memory_space<vmem>>, vector<4x64xf32>
    %cst_57 = arith.constant dense<0.000000e+00> : vector<16x64xf32>
    %131 = tpu.matmul %129, %130, %cst_57 {dimension_numbers = #tpu.dot_dimension_numbers<[1], [0], [0], [1], [0, 0, 1, 1], [], []>} : vector<16x4xf32>, vector<4x64xf32>, vector<16x64xf32> -> vector<16x64xf32>
    %132 = arith.mulf %115, %131 : vector<16x64xf32>
    %133 = tpu.concatenate %83, %83, %83, %83 in 0 : vector<16x64xf32>, vector<16x64xf32>, vector<16x64xf32>, vector<16x64xf32> -> vector<64x64xf32>
    %c0_58 = arith.constant 0 : index
    %c0_59 = arith.constant 0 : index
    %134 = vector.load %arg10[%c0_58, %c0_59] : memref<64x64xf32, #tpu.memory_space<vmem>>, vector<64x64xf32>
    %135 = arith.mulf %133, %134 : vector<64x64xf32>
    %136 = arith.truncf %132 : vector<16x64xf32> to vector<16x64xbf16>
    %137 = arith.truncf %135 : vector<64x64xf32> to vector<64x64xbf16>
    %cst_60 = arith.constant dense<0.000000e+00> : vector<16x64xf32>
    %138 = tpu.matmul %136, %137, %cst_60 {dimension_numbers = #tpu.dot_dimension_numbers<[1], [0], [0], [1], [0, 0, 1, 1], [], []>} : vector<16x64xbf16>, vector<64x64xbf16>, vector<16x64xf32> -> vector<16x64xf32>
    %cst_61 = arith.constant 0.000000e+00 : f32
    %139 = vector.broadcast %cst_61 : f32 to vector<16x64xf32>
    %140 = arith.minimumf %138, %139 : vector<16x64xf32>
    %cst_62 = arith.constant -7.812500e-03 : f32
    %141 = vector.broadcast %cst_62 : f32 to vector<16x64xf32>
    %142 = arith.cmpf olt, %140, %141 : vector<16x64xf32>
    %143 = math.exp %140 : vector<16x64xf32>
    %cst_63 = arith.constant 1.000000e+00 : f32
    %144 = vector.broadcast %cst_63 : f32 to vector<16x64xf32>
    %145 = arith.subf %143, %144 : vector<16x64xf32>
    %cst_64 = arith.constant 5.000000e-01 : f32
    %146 = vector.broadcast %cst_64 : f32 to vector<16x64xf32>
    %147 = arith.mulf %146, %140 : vector<16x64xf32>
    %148 = arith.mulf %147, %140 : vector<16x64xf32>
    %cst_65 = arith.constant 0.333333343 : f32
    %149 = vector.broadcast %cst_65 : f32 to vector<16x64xf32>
    %150 = arith.mulf %140, %149 : vector<16x64xf32>
    %cst_66 = arith.constant 1.000000e+00 : f32
    %151 = vector.broadcast %cst_66 : f32 to vector<16x64xf32>
    %152 = arith.addf %151, %150 : vector<16x64xf32>
    %153 = arith.mulf %148, %152 : vector<16x64xf32>
    %154 = arith.addf %140, %153 : vector<16x64xf32>
    %155 = arith.select %142, %145, %154 : vector<16x64xi1>, vector<16x64xf32>
    %cst_67 = arith.constant 0.000000e+00 : f32
    %156 = vector.broadcast %cst_67 : f32 to vector<16x64xf32>
    %157 = arith.cmpf ogt, %138, %156 : vector<16x64xf32>
    %158 = arith.select %157, %138, %155 : vector<16x64xi1>, vector<16x64xf32>
    %159 = arith.truncf %158 : vector<16x64xf32> to vector<16x64xbf16>
    %c0_68 = arith.constant 0 : index
    %c0_69 = arith.constant 0 : index
    %160 = vector.load %arg11[%c0_68, %c0_69] : memref<64x40xbf16, #tpu.memory_space<vmem>>, vector<64x40xbf16>
    %cst_70 = arith.constant dense<0.000000e+00> : vector<16x40xf32>
    %161 = tpu.matmul %159, %160, %cst_70 {dimension_numbers = #tpu.dot_dimension_numbers<[1], [0], [0], [1], [0, 0, 1, 1], [], []>} : vector<16x64xbf16>, vector<64x40xbf16>, vector<16x40xf32> -> vector<16x40xf32>
    %162 = vector.extract_strided_slice %161 {offsets = [0, 0], sizes = [16, 8], strides = [1, 1]} : vector<16x40xf32> to vector<16x8xf32>
    %163 = vector.extract_strided_slice %161 {offsets = [0, 8], sizes = [16, 16], strides = [1, 1]} : vector<16x40xf32> to vector<16x16xf32>
    %164 = vector.extract_strided_slice %161 {offsets = [0, 24], sizes = [16, 16], strides = [1, 1]} : vector<16x40xf32> to vector<16x16xf32>
    %c0_71 = arith.constant 0 : index
    %c0_72 = arith.constant 0 : index
    %165 = vector.load %arg13[%c0_71, %c0_72] : memref<16x16xf32, #tpu.memory_space<vmem>>, vector<16x16xf32>
    %166 = arith.mulf %164, %165 : vector<16x16xf32>
    %cst_73 = arith.constant dense<0.000000e+00> : vector<16xf32>
    %167 = vector.multi_reduction <add>, %166, %cst_73 [0] : vector<16x16xf32> to vector<16xf32>
    %168 = vector.shape_cast %167 : vector<16xf32> to vector<1x16xf32>
    %169 = vector.broadcast %168 : vector<1x16xf32> to vector<16x16xf32>
    %170 = arith.addf %163, %169 : vector<16x16xf32>
    %cst_74 = arith.constant 0.000000e+00 : f32
    %171 = vector.broadcast %cst_74 : f32 to vector<16x16xf32>
    %172 = arith.cmpf ogt, %170, %171 : vector<16x16xf32>
    %cst_75 = arith.constant 2.000000e-01 : f32
    %173 = vector.broadcast %cst_75 : f32 to vector<16x16xf32>
    %174 = arith.mulf %173, %170 : vector<16x16xf32>
    %175 = arith.select %172, %170, %174 : vector<16x16xi1>, vector<16x16xf32>
    %c0_76 = arith.constant 0 : index
    %c0_77 = arith.constant 0 : index
    %176 = vector.load %arg12[%c0_76, %c0_77] : memref<16x16xf32, #tpu.memory_space<vmem>>, vector<16x16xf32>
    %177 = arith.addf %175, %176 : vector<16x16xf32>
    %cst_78 = arith.constant dense<0xFF800000> : vector<16xf32>
    %178 = vector.multi_reduction <maximumf>, %177, %cst_78 [1] : vector<16x16xf32> to vector<16xf32>
    %179 = vector.shape_cast %178 : vector<16xf32> to vector<16x1xf32>
    %180 = vector.broadcast %179 : vector<16x1xf32> to vector<16x16xf32>
    %181 = arith.subf %177, %180 : vector<16x16xf32>
    %182 = math.exp %181 : vector<16x16xf32>
    %cst_79 = arith.constant dense<0.000000e+00> : vector<16xf32>
    %183 = vector.multi_reduction <add>, %182, %cst_79 [1] : vector<16x16xf32> to vector<16xf32>
    %184 = vector.shape_cast %183 : vector<16xf32> to vector<16x1xf32>
    %185 = tpu.reciprocal %184 {approx = true} : vector<16x1xf32> -> vector<16x1xf32>
    %186 = vector.broadcast %185 : vector<16x1xf32> to vector<16x16xf32>
    %187 = arith.mulf %182, %186 : vector<16x16xf32>
    %188 = arith.truncf %187 : vector<16x16xf32> to vector<16x16xbf16>
    %189 = arith.truncf %162 : vector<16x8xf32> to vector<16x8xbf16>
    %cst_80 = arith.constant dense<0.000000e+00> : vector<16x8xf32>
    %190 = tpu.matmul %188, %189, %cst_80 {dimension_numbers = #tpu.dot_dimension_numbers<[1], [0], [0], [1], [0, 0, 1, 1], [], []>} : vector<16x16xbf16>, vector<16x8xbf16>, vector<16x8xf32> -> vector<16x8xf32>
    %cst_81 = arith.constant 0.000000e+00 : f32
    %191 = vector.broadcast %cst_81 : f32 to vector<16x120xf32>
    %192 = tpu.concatenate %190, %191 in 1 : vector<16x8xf32>, vector<16x120xf32> -> vector<16x128xf32>
    %c0_82 = arith.constant 0 : index
    %c0_83 = arith.constant 0 : index
    %193 = vector.load %arg14[%c0_82, %c0_83] : memref<16x128xf32, #tpu.memory_space<vmem>>, vector<16x128xf32>
    tpu.vector_store %arg14[%c0_82, %c0_83], %192 {strides = array<i32>} : memref<16x128xf32, #tpu.memory_space<vmem>>, vector<16x128xf32>,
    return
  }
}

</mosaic_0001>

<bundles_post_ra>
// kernel: tile.24
= control target key start
LH: loop header
LB: loop body
LE: loop exit
PB: predicated region body
PF: predicated region fallthrough
CT: control target
= control target key end

     0   :  { %vm83_vm0 = vcmask 1047556   ;;  %vm85_vm1 = vcmask 130048   ;;  %s196_s9 = smov 48   ;;  %s197_s14 = smov 16   ;;  %vm104_vm2 = vcmask 523648   ;;  %vm125_vm3 = vcmask 392448   ;;  %s290_s0 = inlined_call_operand.vmem [shape: f32[16,4,16], index: 0, kind: input, shape index: {}]   ;;  %s291_s1 = inlined_call_operand.vmem [shape: f32[16,64], index: 1, kind: output, shape index: {}]  }
   0x1   :  { %v181_v0 = vld [vmem:[%s290_s0 + $0x1c] sm:$0xf]  ;;  %v182_v1 = vld [vmem:[%s290_s0 + $0x18] sm:$0xf]  ;;  %v183_v2 = vld [vmem:[%s290_s0 + $0x14] sm:$0xf] }
   0x2   :  { %49 = vst [vmem:[#allocation0 + $0x38] sm:$0xf] %v181_v0  ;;  %54 = vst [vmem:[#allocation0 + $0x30] sm:$0xf] %v182_v1  ;;  %v184_v3 = vld [vmem:[%s290_s0 + $0x10] sm:$0xf] }
   0x3   :  { %59 = vst [vmem:[#allocation0 + $0x28] sm:$0xf] %v183_v2  ;;  %v185_v4 = vld [vmem:[%s290_s0 + $0xc] sm:$0xf]  ;;  %v186_v5 = vld [vmem:[%s290_s0 + $0x8] sm:$0xf] }
   0x4   :  { %64 = vst [vmem:[#allocation0 + $0x20] sm:$0xf] %v184_v3  ;;  %69 = vst [vmem:[#allocation0 + $0x18] sm:$0xf] %v185_v4  ;;  %v187_v6 = vld [vmem:[%s290_s0 + $0x4] sm:$0xf] }
   0x5   :  { %74 = vst [vmem:[#allocation0 + $0x10] sm:$0xf] %v186_v5  ;;  %v79_v7 = vld [vmem:[%s290_s0] sm:$0xf]  ;;  %78 = vst [vmem:[#allocation0 + $0x8] sm:$0xf] %v187_v6 }
   0x6   :  { %80 = vst [vmem:[#allocation0] sm:$0xf] %v79_v7  ;;  %v173_v8 = vld [vmem:[%s290_s0 + $0x3c] sm:$0xf]  ;;  %v174_v9 = vld [vmem:[%s290_s0 + $0x38] sm:$0xf] }
   0x7   :  { %9 = vst [vmem:[#allocation0 + $0x78] sm:$0xf] %v173_v8  ;;  %14 = vst [vmem:[#allocation0 + $0x70] sm:$0xf] %v174_v9  ;;  %v175_v10 = vld [vmem:[%s290_s0 + $0x34] sm:$0xf] }
   0x8   :  { %v176_v11 = vld [vmem:[%s290_s0 + $0x30] sm:$0xf]  ;;  %v177_v12 = vld [vmem:[%s290_s0 + $0x2c] sm:$0xf]  ;;  %19 = vst [vmem:[#allocation0 + $0x68] sm:$0xf] %v175_v10 }
   0x9   :  { %24 = vst [vmem:[#allocation0 + $0x60] sm:$0xf] %v176_v11  ;;  %29 = vst [vmem:[#allocation0 + $0x58] sm:$0xf] %v177_v12  ;;  %v178_v13 = vld [vmem:[%s290_s0 + $0x28] sm:$0xf] }
   0xa   :  { %v179_v14 = vld [vmem:[%s290_s0 + $0x24] sm:$0xf]  ;;  %v180_v15 = vld [vmem:[%s290_s0 + $0x20] sm:$0xf]  ;;  %34 = vst [vmem:[#allocation0 + $0x50] sm:$0xf] %v178_v13 }
   0xb   :  { %39 = vst [vmem:[#allocation0 + $0x48] sm:$0xf] %v179_v14  ;;  %44 = vst [vmem:[#allocation0 + $0x40] sm:$0xf] %v180_v15  ;;  %s195_s0 = smov 32   ;;  %vm146_vm4 = vcmask 261248  }
   0xc   :  { %v120_v16 = vld [vmem:[#allocation0 + $0x2] ss:$8 sm:$0xf0]   ;;  %v99_v17 = vld [vmem:[#allocation0 + $0x3] ss:$8 sm:$0xf0]  }
   0xd   :  { %v118_v18 = vld [vmem:[#allocation0 + $0x2] ss:$8 sm:$0xf]   ;;  %v97_v19 = vld [vmem:[#allocation0 + $0x3] ss:$8 sm:$0xf]  }
   0xe   :  { %v122_v20 = vsel %vm83_vm0, %v120_v16, %v118_v18  ;;  %v101_v21 = vsel %vm83_vm0, %v99_v17, %v97_v19  ;;  %v139_v24 = vld [vmem:[#allocation0 + $0x1] ss:$8 sm:$0xf]   ;;  %v81_v32 = vld [vmem:[#allocation0] ss:$8 sm:$0xf]  }
   0xf   :  { %123 = vrot.lane.b32.xlu1 %v122_v20, %s195_s0  ;;  %102 = vrot.lane.b32.xlu0 %v101_v21, %s196_s9  ;;  %v141_v25 = vld [vmem:[#allocation0 + $0x1] ss:$8 sm:$0xf0]   ;;  %v82_v33 = vld [vmem:[#allocation0] ss:$8 sm:$0xf0]  }
  0x10   :  { %v130_v22 = vld [vmem:[#allocation0 + $0x42] ss:$8 sm:$0xf0]   ;;  %v109_v23 = vld [vmem:[#allocation0 + $0x43] ss:$8 sm:$0xf0]   ;;  %v84_v34 = vsel %vm83_vm0, %v82_v33, %v81_v32  ;;  %v143_v38 = vsel %vm83_vm0, %v141_v25, %v139_v24 }
  0x11   :  { %v151_v31 = vld [vmem:[#allocation0 + $0x41] ss:$8 sm:$0xf0]   ;;  %v90_v36 = vld [vmem:[#allocation0 + $0x40] ss:$8 sm:$0xf0]  }
  0x12   :  { %v128_v26 = vld [vmem:[#allocation0 + $0x42] ss:$8 sm:$0xf]   ;;  %v107_v27 = vld [vmem:[#allocation0 + $0x43] ss:$8 sm:$0xf]  }
  0x13   :  { %v132_v28 = vsel %vm83_vm0, %v130_v22, %v128_v26  ;;  %v111_v29 = vsel %vm83_vm0, %v109_v23, %v107_v27  ;;  %v149_v30 = vld [vmem:[#allocation0 + $0x41] ss:$8 sm:$0xf]   ;;  %v88_v35 = vld [vmem:[#allocation0 + $0x40] ss:$8 sm:$0xf]  }
  0x14   :  { %133 = vrot.lane.b32.xlu1 %v132_v28, %s195_s0  ;;  %112 = vrot.lane.b32.xlu0 %v111_v29, %s196_s9  ;;  %v153_v37 = vsel %vm83_vm0, %v151_v31, %v149_v30  ;;  %86 = vst.msk [vmem:[%s291_s1] sm:$0xff] %vm85_vm1, %v84_v34   ;;  %v92_v39 = vsel %vm83_vm0, %v90_v36, %v88_v35 }
  0x15   :  { %188 = vst.msk [vmem:[%s291_s1 + $0x8] sm:$0xff] %vm85_vm1, %v92_v39  }
  0x18   :  { %154 = vrot.lane.b32.xlu1 %v153_v37, %s197_s14  ;;  %144 = vrot.lane.b32.xlu0 %v143_v38, %s197_s14 }
  0x81   :  { %v124_v40 = vpop.permute.xlu1 %123   ;;  %v103_v41 = vpop.permute.xlu0 %102  }
  0x82   :  { %105 = vst.msk [vmem:[%s291_s1] sm:$0xff] %vm104_vm2, %v103_v41  }
  0x83   :  { %126 = vst.msk [vmem:[%s291_s1] sm:$0xff] %vm125_vm3, %v124_v40  }
  0x86   :  { %v134_v42 = vpop.permute.xlu1 %133   ;;  %v113_v43 = vpop.permute.xlu0 %112  }
  0x87   :  { %189 = vst.msk [vmem:[%s291_s1 + $0x8] sm:$0xff] %vm104_vm2, %v113_v43  }
  0x88   :  { %190 = vst.msk [vmem:[%s291_s1 + $0x8] sm:$0xff] %vm125_vm3, %v134_v42  }
  0x8a   :  { %v155_v44 = vpop.permute.xlu1 %154   ;;  %v145_v45 = vpop.permute.xlu0 %144  }
  0x8b   :  { %191 = vst.msk [vmem:[%s291_s1 + $0x8] sm:$0xff] %vm146_vm4, %v155_v44   ;;  %147 = vst.msk [vmem:[%s291_s1] sm:$0xff] %vm146_vm4, %v145_v45  }

// kernel: _lambda_.1
= control target key start
LH: loop header
LB: loop body
LE: loop exit
PB: predicated region body
PF: predicated region fallthrough
CT: control target
= control target key end

     0   :  { %vm61_vm0 = vcmask 1043456   ;;  %v1438_v1 = vmov 0   ;;  %vm1837_vm1 = vcmask 64512   ;;  %v1439_v8 = vmov 0.0   ;;  %s1440_s20 = smov 64   ;;  %s1442_s24 = smov 32   ;;  %s1822_s1 = inlined_call_operand.vmem [shape: bf16[8,192], index: 1, kind: input, shape index: {}]   ;;  %s1823_s0 = inlined_call_operand.vmem [shape: f32[16,8], index: 0, kind: input, shape index: {}]   ;;  %s1824_s2 = inlined_call_operand.vmem [shape: f32[16,64], index: 2, kind: input, shape index: {}, may-alias: {2,7}]   ;;  %s1825_s3 = inlined_call_operand.vmem [shape: f32[16,64], index: 3, kind: input, shape index: {}, may-alias: {3,8}]   ;;  %s1826_s5 = inlined_call_operand.vmem [shape: f32[64,64], index: 5, kind: input, shape index: {}, may-alias: {5,10}]   ;;  %s1827_s4 = inlined_call_operand.vmem [shape: f32[4,64], index: 4, kind: input, shape index: {}, may-alias: {4,9}]   ;;  %s1828_s6 = inlined_call_operand.vmem [shape: bf16[64,192], index: 6, kind: input, shape index: {}]   ;;  %s1829_s7 = inlined_call_operand.vmem [shape: f32[16,64], index: 7, kind: input, shape index: {}, may-alias: {2,7}]   ;;  %s1830_s8 = inlined_call_operand.vmem [shape: f32[16,64], index: 8, kind: input, shape index: {}, may-alias: {3,8}]   ;;  %s1831_s10 = inlined_call_operand.vmem [shape: f32[64,64], index: 10, kind: input, shape index: {}, may-alias: {5,10}]   ;;  %s1832_s9 = inlined_call_operand.vmem [shape: f32[4,64], index: 9, kind: input, shape index: {}, may-alias: {4,9}]   ;;  %s1833_s11 = inlined_call_operand.vmem [shape: bf16[64,40], index: 11, kind: input, shape index: {}]   ;;  %s1834_s13 = inlined_call_operand.vmem [shape: f32[16,16], index: 13, kind: input, shape index: {}]   ;;  %s1835_s12 = inlined_call_operand.vmem [shape: f32[16,16], index: 12, kind: input, shape index: {}]   ;;  %s1836_s14 = inlined_call_operand.vmem [shape: f32[16,128], index: 14, kind: output, shape index: {}]  }
   0x1   :  { %v51_v0 = vld [vmem:[%s1822_s1] sm:$0xff]  ;;  %100 = vmatprep.mubr.bf16.mxu0 %v1438_v1  ;;  %v49_v3 = vld [vmem:[%s1823_s0 + $0x8] sm:$0xff]  ;;  %v442_v13 = vld [vmem:[%s1826_s5 + $0x30] sm:$0xff]  ;;  %vm115_vm2 = vcmask 523264   ;;  %vm156_vm5 = vcmask 786048   ;;  %vm149_vm6 = vcmask 654848  }
   0x2   :  { %v48_v2 = vld [vmem:[%s1823_s0] sm:$0xff]  ;;  %v1250_v4 = vcombine.high %v51_v0, %v51_v0  ;;  %v1249_v5 = vcombine.low %v51_v0, %v51_v0  ;;  %v138_v9 = vld [vmem:[%s1824_s2 + $0x8] sm:$0xff]  ;;  %v443_v14 = vld [vmem:[%s1826_s5 + $0x38] sm:$0xff]  ;;  %vm163_vm7 = vcmask 917248   ;;  %vm170_vm8 = vcmask 1048448   ;;  %s1443_s25 = smov 16  }
   0x3   :  { %v50_v7 = vpack.c.bf16 %v49_v3, %v48_v2  ;;  %143 = vrot.lane.b32.xlu1 %v138_v9, %s1440_s20  ;;  %v111_v12 = vld [vmem:[%s1825_s3] sm:$0xff]  ;;  %v112_v16 = vld [vmem:[%s1825_s3 + $0x8] sm:$0xff]  ;;  %v439_v27 = vld [vmem:[%s1826_s5 + $0x18] sm:$0xff]  ;;  %vm177_vm9 = vcmask 7168   ;;  %vm180_vm10 = vcmask 15360   ;;  %vm183_vm11 = vcmask 23552  }
   0x4   :  { %1251 = vmatprep.subr.msk.bf16.mxu0 %vm61_vm0, %v1250_v4  ;;  %v63_v6 = vsel %vm61_vm0, %v1249_v5, 0  ;;  %v441_v18 = vld [vmem:[%s1826_s5 + $0x28] sm:$0xff]  ;;  %v440_v22 = vld [vmem:[%s1826_s5 + $0x20] sm:$0xff]  ;;  %v438_v31 = vld [vmem:[%s1826_s5 + $0x10] sm:$0xff]  ;;  %vm187_vm12 = vcmask 31744   ;;  %vm294_vm13 = vcmask 130048  }
   0x5   :  { %83 = vmatpush1.bf16.msra.mxu0 %v63_v6  ;;  %v437_v35 = vld [vmem:[%s1826_s5 + $0x8] sm:$0xff]  ;;  %v436_v38 = vld [vmem:[%s1826_s5] sm:$0xff]  ;;  %vm1444_vm14 = vmmov 0   ;;  %s1445_s17 = smov 24   ;;  %s1446_s18 = smov 8  }
   0x6   :  { %1325 = vmatprep.subr.bf16.mxu0 %v1439_v8  ;;  %v137_v47 = vld [vmem:[%s1824_s2] sm:$0xff]  ;;  %s1447_s1 = smov 112  }
   0x7   :  { %v186_v4 = vld [vmem:[%s1827_s4] sm:$0xf]  ;;  %s1441_s4 = smov 48  }
   0x8   :  { %1252 = vmatmul.mubr.msk.bf16.vlgmr.msra.gmra.mxu0 %vm1837_vm1, %v50_v7  ;;  %1315 = vmatprep.subr.msk.mxu1 %vm61_vm0, %v186_v4 }
   0x9   :  { %1316 = vmatpush3.msk.msra.mxu1 %vm61_vm0, %v186_v4  ;;  %1333 = vmatprep.mubr.msk.bf16.mxu0 %vm1444_vm14, %v1439_v8 }
   0xa   :  { %1320 = vmatprep.subr.msk.mxu1 %vm61_vm0, %v186_v4 }
  0x75   :  { %v144_v54 = vpop.permute.xlu1 %143 }
  0xc8   :  { %v102_v10 = vpop.f32.mrf.mxu0 }
  0xc9   :  { %v450_v19 = vmul.f32 %v442_v13, %v102_v10  ;;  %v448_v29 = vmul.f32 %v440_v22, %v102_v10  ;;  %v446_v36 = vmul.f32 %v438_v31, %v102_v10  ;;  %v444_v42 = vmul.f32 %v436_v38, %v102_v10 }
  0xca   :  { %v104_v11 = vpop.f32.mrf.mxu0 }
  0xcb   :  { %v113_v17 = vmul.f32 %v111_v12, %v104_v11 }
  0xcc   :  { %v106_v15 = vpop.f32.mrf.mxu0 }
  0xcd   :  { %v451_v20 = vmul.f32 %v443_v14, %v106_v15  ;;  %v449_v24 = vmul.f32 %v441_v18, %v106_v15  ;;  %v116_v26 = vsel %vm115_vm2, %v113_v17, 0.0  ;;  %v447_v32 = vmul.f32 %v439_v27, %v106_v15 }
  0xce   :  { %v108_v21 = vpop.f32.mrf.mxu0  ;;  %v445_v39 = vmul.f32 %v437_v35, %v106_v15 }
  0xcf   :  { %v114_v23 = vmul.f32 %v112_v16, %v108_v21  ;;  %v456_v25 = vpack.c.bf16 %v451_v20, %v450_v19  ;;  %v455_v34 = vpack.c.bf16 %v449_v24, %v448_v29  ;;  %v454_v40 = vpack.c.bf16 %v447_v32, %v446_v36 }
  0xd0   :  { %v453_v44 = vpack.c.bf16 %v445_v39, %v444_v42 }
  0xd1   :  { %v117_v28 = vsel %vm115_vm2, %v114_v23, 0.0  ;;  %1326 = vmatpush3.bf16.msra.mxu0 %v456_v25 }
  0xd2   :  { %v118_v30 = vadd.f32 %v117_v28, %v116_v26  ;;  %1327 = vmatprep.subr.bf16.mxu0 %v1439_v8 }
  0xd4   :  { %v119_v33 = vrot.slane %v118_v30, 4 }
  0xd5   :  { %1328 = vmatpush3.bf16.msra.mxu0 %v455_v34 }
  0xd6   :  { %v120_v37 = vadd.f32 %v119_v33, %v118_v30  ;;  %1329 = vmatprep.subr.bf16.mxu0 %v1439_v8 }
  0xd8   :  { %v121_v41 = vrot.slane %v120_v37, 2 }
  0xd9   :  { %1330 = vmatpush3.bf16.msra.mxu0 %v454_v40 }
  0xda   :  { %v122_v43 = vadd.f32 %v121_v41, %v120_v37  ;;  %1331 = vmatprep.subr.bf16.mxu0 %v1439_v8 }
  0xdc   :  { %v123_v45 = vrot.slane %v122_v43, 1 }
  0xdd   :  { %1332 = vmatpush3.bf16.msra.mxu0 %v453_v44 }
  0xde   :  { %v124_v46 = vadd.f32 %v123_v45, %v122_v43  ;;  %1347 = vmatprep.subr.bf16.mxu0 %v1439_v8 }
  0xe0   :  { %126 = vrot.lane.b32.xlu0 %v124_v46, %s1440_s20 }
  0xe4   :  { %141 = vrot.lane.b32.xlu0 %v137_v47, %s1440_s20 }
 0x152   :  { %v127_v48 = vpop.permute.xlu0 %126 }
 0x153   :  { %v129_v49 = vadd.f32 %v127_v48, %v102_v10  ;;  %v130_v50 = vadd.f32 %v127_v48, %v106_v15 }
 0x155   :  { %vm132_vm3 = vcmp.gt.f32.partialorder %v130_v50, 0.0  ;;  %v134_v51 = vmul.f32 0.2, %v130_v50  ;;  %vm131_vm4 = vcmp.gt.f32.partialorder %v129_v49, 0.0  ;;  %v133_v52 = vmul.f32 0.2, %v129_v49 }
 0x156   :  { %v142_v53 = vpop.permute.xlu0 %141 }
 0x157   :  { %v136_v55 = vsel %vm132_vm3, %v130_v50, %v134_v51  ;;  %v135_v56 = vsel %vm131_vm4, %v129_v49, %v133_v52 }
 0x158   :  { %v147_v57 = vadd.f32 %v142_v53, %v135_v56  ;;  %v148_v58 = vadd.f32 %v144_v54, %v136_v55 }
 0x15a   :  { %v157_v59 = vsel %vm156_vm5, %v147_v57, -inf  ;;  %v150_v60 = vsel %vm149_vm6, %v147_v57, -inf  ;;  %v153_v61 = vsel %vm149_vm6, %v148_v58, -inf  ;;  %v160_v62 = vsel %vm156_vm5, %v148_v58, -inf }
 0x15b   :  { %158 = vmax.xlane.f32.xlu0 %v157_v59  ;;  %151 = vmax.xlane.f32.xlu1 %v150_v60  ;;  %v164_v63 = vsel %vm163_vm7, %v147_v57, -inf  ;;  %v167_v0 = vsel %vm163_vm7, %v148_v58, -inf  ;;  %v171_v2 = vsel %vm170_vm8, %v147_v57, -inf  ;;  %v174_v3 = vsel %vm170_vm8, %v148_v58, -inf }
 0x15f   :  { %154 = vmax.xlane.f32.xlu0 %v153_v61  ;;  %161 = vmax.xlane.f32.xlu1 %v160_v62 }
 0x163   :  { %165 = vmax.xlane.f32.xlu0 %v164_v63  ;;  %168 = vmax.xlane.f32.xlu1 %v167_v0 }
 0x167   :  { %172 = vmax.xlane.f32.xlu0 %v171_v2  ;;  %175 = vmax.xlane.f32.xlu1 %v174_v3 }
 0x1e4   :  { %v159_v5 = vpop.xlane.xlu0 %158  ;;  %v152_v6 = vpop.xlane.xlu1 %151 }
 0x1e5   :  { %v178_v12 = vsel %vm177_vm9, %v152_v6, %v159_v5  ;;  %v1392_v6 = vld [vmem:[%s1828_s6 + $0x34] ss:$8 sps:$4 sm:$0xff]  }
 0x1e8   :  { %v155_v7 = vpop.xlane.xlu0 %154  ;;  %v162_v9 = vpop.xlane.xlu1 %161 }
 0x1e9   :  { %v179_v13 = vsel %vm177_vm9, %v155_v7, %v162_v9  ;;  %v1390_v7 = vld [vmem:[%s1828_s6 + $0x30] ss:$8 sps:$4 sm:$0xff]   ;;  %v1395_v9 = vld [vmem:[%s1828_s6 + $0x24] ss:$8 sps:$4 sm:$0xff]  }
 0x1ec   :  { %v166_v10 = vpop.xlane.xlu0 %165  ;;  %v169_v11 = vpop.xlane.xlu1 %168 }
 0x1ed   :  { %v181_v14 = vsel %vm180_vm10, %v178_v12, %v166_v10  ;;  %v182_v15 = vsel %vm180_vm10, %v179_v13, %v169_v11  ;;  %v1393_v10 = vld [vmem:[%s1828_s6 + $0x20] ss:$8 sps:$4 sm:$0xff]   ;;  %v1398_v11 = vld [vmem:[%s1828_s6 + $0x14] ss:$8 sps:$4 sm:$0xff]   ;;  %v1396_v12 = vld [vmem:[%s1828_s6 + $0x10] ss:$8 sps:$4 sm:$0xff]  }
 0x1ee   :  { %v1401_v13 = vld [vmem:[%s1828_s6 + $0x4] ss:$8 sps:$4 sm:$0xff]  }
 0x1f0   :  { %v173_v16 = vpop.xlane.xlu0 %172  ;;  %v176_v17 = vpop.xlane.xlu1 %175 }
 0x1f1   :  { %v185_v18 = vsel %vm183_vm11, %v182_v15, %v176_v17  ;;  %v184_v19 = vsel %vm183_vm11, %v181_v14, %v173_v16  ;;  %v1399_v14 = vld [vmem:[%s1828_s6] ss:$8 sps:$4 sm:$0xff]  }
 0x1f2   :  { %1317 = vmatprep.mubr.msk.f32.mxu1 %vm187_vm12, %v184_v19 }
 0x1f3   :  { %1318 = vmatmul.mubr.msk.f32.vlgmr.msra.gmra.mxu1 %vm187_vm12, %v185_v18 }
 0x1f4   :  { %1321 = vmatpush3.msk.msra.mxu1 %vm61_vm0, %v186_v4 }
 0x1f5   :  { %592 = vmatprep.subr.bf16.mxu1 %v1392_v6  ;;  %v943_v6 = vld [vmem:[%s1831_s10 + $0x8] sm:$0xff] }
 0x2b3   :  { %v1319_v20 = vpop.f32.mrf.mxu1 }
 0x2b4   :  { %276 = vrot.lane.b32.xlu1 %v1319_v20, %s1440_s20 }
 0x2b5   :  { %v263_v21 = vpop.f32.mrf.mxu1 }
 0x2b6   :  { %274 = vrot.lane.b32.xlu0 %v263_v21, %s1440_s20 }
 0x326   :  { %v277_v22 = vpop.permute.xlu1 %276 }
 0x327   :  { %v281_v23 = vsub.f32 %v148_v58, %v277_v22 }
 0x328   :  { %v275_v24 = vpop.permute.xlu0 %274 }
 0x329   :  { %v284_v25 = vmul.f32 1.442695, %v281_v23  ;;  %v280_v26 = vsub.f32 %v147_v57, %v275_v24 }
 0x32b   :  { %1406 = vpow2.f32 %v284_v25  ;;  %v282_v27 = vmul.f32 1.442695, %v280_v26 }
 0x32d   :  { %1408 = vpow2.f32 %v282_v27 }
 0x338   :  { %v1608_v28 = vpop.eup %1406 }
 0x339   :  { %290 = vrot.lane.b32.xlu1 %v1608_v28, %s1440_s20  ;;  %303 = vrot.lane.b32.xlu0 %v1608_v28, %s1441_s4 }
 0x33a   :  { %v1614_v29 = vpop.eup %1408 }
 0x33d   :  { %315 = vrot.lane.b32.xlu0 %v1608_v28, %s1442_s24  ;;  %288 = vrot.lane.b32.xlu1 %v1614_v29, %s1440_s20 }
 0x341   :  { %301 = vrot.lane.b32.xlu0 %v1614_v29, %s1441_s4  ;;  %313 = vrot.lane.b32.xlu1 %v1614_v29, %s1442_s24 }
 0x345   :  { %327 = vrot.lane.b32.xlu0 %v1608_v28, %s1443_s25  ;;  %325 = vrot.lane.b32.xlu1 %v1614_v29, %s1443_s25 }
 0x3ab   :  { %v291_v30 = vpop.permute.xlu1 %290  ;;  %v304_v31 = vpop.permute.xlu0 %303 }
 0x3ac   :  { %v298_v32 = vsel %vm294_vm13, %v291_v30, 0.0  ;;  %v310_v33 = vsel %vm294_vm13, %v304_v31, 0.0 }
 0x3ad   :  { %299 = vadd.xlane.f32.xlu0 %v298_v32  ;;  %311 = vadd.xlane.f32.xlu1 %v310_v33 }
 0x3af   :  { %v289_v34 = vpop.permute.xlu1 %288  ;;  %v316_v35 = vpop.permute.xlu0 %315 }
 0x3b0   :  { %v322_v36 = vsel %vm294_vm13, %v316_v35, 0.0  ;;  %v295_v39 = vsel %vm294_vm13, %v289_v34, 0.0 }
 0x3b1   :  { %323 = vadd.xlane.f32.xlu1 %v322_v36 }
 0x3b3   :  { %v314_v37 = vpop.permute.xlu1 %313  ;;  %v302_v38 = vpop.permute.xlu0 %301 }
 0x3b4   :  { %v307_v40 = vsel %vm294_vm13, %v302_v38, 0.0  ;;  %v319_v42 = vsel %vm294_vm13, %v314_v37, 0.0 }
 0x3b5   :  { %296 = vadd.xlane.f32.xlu1 %v295_v39  ;;  %308 = vadd.xlane.f32.xlu0 %v307_v40 }
 0x3b7   :  { %v328_v41 = vpop.permute.xlu0 %327  ;;  %v326_v44 = vpop.permute.xlu1 %325 }
 0x3b8   :  { %v334_v43 = vsel %vm294_vm13, %v328_v41, 0.0  ;;  %v331_v45 = vsel %vm294_vm13, %v326_v44, 0.0  ;;  %v652_v44 = vld [vmem:[%s1829_s7] sm:$0xff] }
 0x3b9   :  { %320 = vadd.xlane.f32.xlu0 %v319_v42  ;;  %335 = vadd.xlane.f32.xlu1 %v334_v43 }
 0x3bd   :  { %332 = vadd.xlane.f32.xlu0 %v331_v45 }
 0x436   :  { %v312_v46 = vpop.xlane.xlu1 %311  ;;  %v300_v47 = vpop.xlane.xlu0 %299 }
 0x437   :  { %v338_v53 = vsel %vm177_vm9, %v300_v47, %v312_v46  ;;  %v627_v47 = vld [vmem:[%s1830_s8] sm:$0xff] }
 0x43a   :  { %v324_v48 = vpop.xlane.xlu1 %323 }
 0x43b   :  { %v340_v54 = vsel %vm180_vm10, %v338_v53, %v324_v48  ;;  %v948_v48 = vld [vmem:[%s1831_s10 + $0x30] sm:$0xff]  ;;  %v947_v53 = vld [vmem:[%s1831_s10 + $0x28] sm:$0xff] }
 0x43e   :  { %v297_v49 = vpop.xlane.xlu1 %296  ;;  %v309_v50 = vpop.xlane.xlu0 %308 }
 0x43f   :  { %v337_v55 = vsel %vm177_vm9, %v297_v49, %v309_v50  ;;  %v949_v49 = vld [vmem:[%s1831_s10 + $0x38] sm:$0xff] }
 0x442   :  { %v321_v51 = vpop.xlane.xlu0 %320  ;;  %v336_v52 = vpop.xlane.xlu1 %335 }
 0x443   :  { %v342_v56 = vsel %vm183_vm11, %v340_v54, %v336_v52  ;;  %v339_v57 = vsel %vm180_vm10, %v337_v55, %v321_v51  ;;  %v628_v51 = vld [vmem:[%s1830_s8 + $0x8] sm:$0xff] }
 0x446   :  { %v333_v58 = vpop.xlane.xlu0 %332 }
 0x447   :  { %v341_v59 = vsel %vm183_vm11, %v339_v57, %v333_v58  ;;  %v946_v57 = vld [vmem:[%s1831_s10 + $0x20] sm:$0xff] }
 0x448   :  { %1410 = vrcp.f32 %v341_v59 }
 0x449   :  { %1412 = vrcp.f32 %v342_v56 }
 0x455   :  { %v1411_v60 = vpop.eup %1410 }
 0x456   :  { %v1413_v61 = vpop.eup %1412  ;;  %1322 = vmatprep.mubr.msk.f32.mxu1 %vm187_vm12, %v1411_v60 }
 0x457   :  { %1323 = vmatmul.mubr.msk.f32.vlgmr.msra.gmra.mxu1 %vm187_vm12, %v1413_v61 }
 0x458   :  { %616 = vmatprep.mubr.bf16.mxu1 %v1438_v1  ;;  %593 = vmatpush1.bf16.msra.mxu1 %v1390_v7 }
 0x459   :  { %594 = vmatprep.subr.bf16.mxu1 %v1395_v9 }
 0x45c   :  { %595 = vmatpush1.bf16.msra.mxu1 %v1393_v10  ;;  %v942_v10 = vld [vmem:[%s1831_s10] sm:$0xff] }
 0x45d   :  { %596 = vmatprep.subr.bf16.mxu1 %v1398_v11 }
 0x460   :  { %597 = vmatpush1.bf16.msra.mxu1 %v1396_v12 }
 0x461   :  { %598 = vmatprep.subr.bf16.mxu1 %v1401_v13 }
 0x464   :  { %599 = vmatpush1.bf16.msra.mxu1 %v1399_v14 }
 0x517   :  { %v1324_v62 = vpop.f32.mrf.mxu1 }
 0x518   :  { %430 = vrot.lane.b32.xlu1 %v1324_v62, %s1440_s20  ;;  %v945_v62 = vld [vmem:[%s1831_s10 + $0x18] sm:$0xff] }
 0x519   :  { %v417_v63 = vpop.f32.mrf.mxu1 }
 0x51a   :  { %428 = vrot.lane.b32.xlu0 %v417_v63, %s1440_s20 }
 0x58a   :  { %v431_v0 = vpop.permute.xlu1 %430 }
 0x58b   :  { %v435_v3 = vmul.f32 %v1608_v28, %v431_v0 }
 0x58c   :  { %v429_v2 = vpop.permute.xlu0 %428 }
 0x58d   :  { %v434_v4 = vmul.f32 %v1614_v29, %v429_v2 }
 0x58f   :  { %v452_v5 = vpack.c.bf16 %v435_v3, %v434_v4  ;;  %v944_v3 = vld [vmem:[%s1831_s10 + $0x10] sm:$0xff] }
 0x591   :  { %458 = vrot.lane.b32.xlu1 %v452_v5, %s1440_s20 }
 0x595   :  { %656 = vrot.lane.b32.xlu1 %v652_v44, %s1440_s20 }
 0x603   :  { %v459_v1 = vpop.permute.xlu1 %458 }
 0x604   :  { %1334 = vmatmul.mubr.msk.bf16.vlgmr.msra.gmra.mxu0 %vm115_vm2, %v459_v1 }
 0x605   :  { %1355 = vmatprep.mubr.msk.bf16.mxu0 %vm1444_vm14, %v1439_v8 }
 0x6c4   :  { %v497_v15 = vpop.f32.mrf.mxu0 }
 0x6c5   :  { %v504_v16 = vmin.f32 %v497_v15, 0.0  ;;  %vm528_vm4 = vcmp.gt.f32.partialorder %v497_v15, 0.0 }
 0x6c6   :  { %v1335_v17 = vpop.f32.mrf.mxu0 }
 0x6c7   :  { %v508_v18 = vmul.f32 1.442695, %v504_v16  ;;  %v514_v23 = vmul.f32 0.5, %v504_v16  ;;  %v518_v24 = vmul.f32 0.33333334, %v504_v16  ;;  %vm506_vm15 = vcmp.lt.f32.partialorder %v504_v16, -0.0078125 }
 0x6c8   :  { %v500_v19 = vpop.f32.mrf.mxu0 }
 0x6c9   :  { %1414 = vpow2.f32 %v508_v18  ;;  %v505_v20 = vmin.f32 %v500_v19, 0.0  ;;  %v516_v27 = vmul.f32 %v514_v23, %v504_v16  ;;  %v520_v28 = vadd.f32 1.0, %v518_v24 }
 0x6ca   :  { %v1336_v21 = vpop.f32.mrf.mxu0  ;;  %vm529_vm1 = vcmp.gt.f32.partialorder %v500_v19, 0.0 }
 0x6cb   :  { %v510_v22 = vmul.f32 1.442695, %v505_v20  ;;  %v515_v25 = vmul.f32 0.5, %v505_v20  ;;  %v519_v26 = vmul.f32 0.33333334, %v505_v20  ;;  %v522_v31 = vmul.f32 %v520_v28, %v516_v27 }
 0x6cc   :  { %vm507_vm3 = vcmp.lt.f32.partialorder %v505_v20, -0.0078125 }
 0x6cd   :  { %1416 = vpow2.f32 %v510_v22  ;;  %v517_v29 = vmul.f32 %v515_v25, %v505_v20  ;;  %v521_v30 = vadd.f32 1.0, %v519_v26  ;;  %v524_v35 = vadd.f32 %v522_v31, %v504_v16  ;;  %v657_v25 = vpop.permute.xlu1 %656 }
 0x6cf   :  { %v523_v34 = vmul.f32 %v521_v30, %v517_v29 }
 0x6d1   :  { %v525_v39 = vadd.f32 %v523_v34, %v505_v20 }
 0x6d6   :  { %v1415_v32 = vpop.eup %1414 }
 0x6d7   :  { %v1260_v33 = vadd.f32 -1.0, %v1415_v32 }
 0x6d9   :  { %v526_v37 = vsel %vm506_vm15, %v1260_v33, %v524_v35 }
 0x6da   :  { %v1417_v36 = vpop.eup %1416  ;;  %v530_v41 = vsel %vm528_vm4, %v497_v15, %v526_v37 }
 0x6db   :  { %v1261_v38 = vadd.f32 -1.0, %v1417_v36 }
 0x6dd   :  { %v527_v40 = vsel %vm507_vm3, %v1261_v38, %v525_v39  ;;  %v694_v39 = vld [vmem:[%s1832_s9] sm:$0xf] }
 0x6de   :  { %v531_v42 = vsel %vm529_vm1, %v500_v19, %v527_v40  ;;  %v653_v19 = vld [vmem:[%s1829_s7 + $0x8] sm:$0xff]  ;;  %1337 = vmatprep.subr.msk.mxu1 %vm61_vm0, %v694_v39 }
 0x6df   :  { %v532_v43 = vpack.c.bf16 %v531_v42, %v530_v41 }
 0x6e1   :  { %1270 = vmatmul.mubr.msk.bf16.vlgmr.msra.gmra.mxu1 %vm115_vm2, %v532_v43 }
 0x6e2   :  { %1338 = vmatpush3.msk.msra.mxu1 %vm61_vm0, %v694_v39 }
 0x6e3   :  { %1342 = vmatprep.subr.msk.mxu1 %vm61_vm0, %v694_v39 }
 0x7a1   :  { %v618_v45 = vpop.f32.mrf.mxu1 }
 0x7a2   :  { %v956_v54 = vmul.f32 %v948_v48, %v618_v45  ;;  %v954_v0 = vmul.f32 %v946_v57, %v618_v45  ;;  %v952_v7 = vmul.f32 %v944_v3, %v618_v45  ;;  %v950_v14 = vmul.f32 %v942_v10, %v618_v45 }
 0x7a3   :  { %v620_v46 = vpop.f32.mrf.mxu1 }
 0x7a4   :  { %v629_v52 = vmul.f32 %v627_v47, %v620_v46 }
 0x7a5   :  { %v622_v50 = vpop.f32.mrf.mxu1 }
 0x7a6   :  { %v957_v55 = vmul.f32 %v949_v49, %v622_v50  ;;  %v955_v59 = vmul.f32 %v947_v53, %v622_v50  ;;  %v631_v61 = vsel %vm115_vm2, %v629_v52, 0.0  ;;  %v953_v4 = vmul.f32 %v945_v62, %v622_v50 }
 0x7a7   :  { %v624_v56 = vpop.f32.mrf.mxu1  ;;  %v951_v11 = vmul.f32 %v943_v6, %v622_v50 }
 0x7a8   :  { %v630_v58 = vmul.f32 %v628_v51, %v624_v56  ;;  %v962_v60 = vpack.c.bf16 %v957_v55, %v956_v54  ;;  %v961_v1 = vpack.c.bf16 %v955_v59, %v954_v0  ;;  %v960_v13 = vpack.c.bf16 %v953_v4, %v952_v7 }
 0x7a9   :  { %v959_v16 = vpack.c.bf16 %v951_v11, %v950_v14 }
 0x7aa   :  { %v632_v63 = vsel %vm115_vm2, %v630_v58, 0.0  ;;  %1348 = vmatpush3.bf16.msra.mxu0 %v962_v60 }
 0x7ab   :  { %v633_v2 = vadd.f32 %v632_v63, %v631_v61  ;;  %1349 = vmatprep.subr.bf16.mxu0 %v1439_v8 }
 0x7ad   :  { %v634_v5 = vrot.slane %v633_v2, 4 }
 0x7ae   :  { %1350 = vmatpush3.bf16.msra.mxu0 %v961_v1 }
 0x7af   :  { %v635_v9 = vadd.f32 %v634_v5, %v633_v2  ;;  %1351 = vmatprep.subr.bf16.mxu0 %v1439_v8 }
 0x7b1   :  { %v636_v12 = vrot.slane %v635_v9, 2 }
 0x7b2   :  { %1352 = vmatpush3.bf16.msra.mxu0 %v960_v13 }
 0x7b3   :  { %v637_v15 = vadd.f32 %v636_v12, %v635_v9  ;;  %1353 = vmatprep.subr.bf16.mxu0 %v1439_v8 }
 0x7b5   :  { %v638_v17 = vrot.slane %v637_v15, 1 }
 0x7b6   :  { %1354 = vmatpush3.bf16.msra.mxu0 %v959_v16 }
 0x7b7   :  { %v639_v18 = vadd.f32 %v638_v17, %v637_v15  ;;  %1371 = vmatprep.subr.bf16.mxu0 %v1439_v8 }
 0x7b9   :  { %641 = vrot.lane.b32.xlu0 %v639_v18, %s1440_s20 }
 0x7bd   :  { %658 = vrot.lane.b32.xlu0 %v653_v19, %s1440_s20 }
 0x82b   :  { %v642_v20 = vpop.permute.xlu0 %641 }
 0x82c   :  { %v644_v21 = vadd.f32 %v642_v20, %v618_v45  ;;  %v645_v22 = vadd.f32 %v642_v20, %v622_v50 }
 0x82e   :  { %vm647_vm1 = vcmp.gt.f32.partialorder %v645_v22, 0.0  ;;  %v649_v23 = vmul.f32 0.2, %v645_v22  ;;  %vm646_vm15 = vcmp.gt.f32.partialorder %v644_v21, 0.0  ;;  %v648_v24 = vmul.f32 0.2, %v644_v21 }
 0x82f   :  { %v659_v27 = vpop.permute.xlu0 %658 }
 0x830   :  { %v651_v26 = vsel %vm647_vm1, %v645_v22, %v649_v23  ;;  %v650_v28 = vsel %vm646_vm15, %v644_v21, %v648_v24 }
 0x831   :  { %v662_v29 = vadd.f32 %v657_v25, %v650_v28  ;;  %v663_v30 = vadd.f32 %v659_v27, %v651_v26 }
 0x833   :  { %v670_v31 = vsel %vm156_vm5, %v662_v29, -inf  ;;  %v664_v32 = vsel %vm149_vm6, %v662_v29, -inf  ;;  %v667_v33 = vsel %vm149_vm6, %v663_v30, -inf  ;;  %v673_v34 = vsel %vm156_vm5, %v663_v30, -inf }
 0x834   :  { %671 = vmax.xlane.f32.xlu0 %v670_v31  ;;  %665 = vmax.xlane.f32.xlu1 %v664_v32  ;;  %v676_v35 = vsel %vm163_vm7, %v662_v29, -inf  ;;  %v679_v36 = vsel %vm163_vm7, %v663_v30, -inf  ;;  %v682_v37 = vsel %vm170_vm8, %v662_v29, -inf  ;;  %v685_v38 = vsel %vm170_vm8, %v663_v30, -inf }
 0x835   :  { %vm1127_vm8 = vcmask 326848  }
 0x838   :  { %668 = vmax.xlane.f32.xlu0 %v667_v33  ;;  %674 = vmax.xlane.f32.xlu1 %v673_v34 }
 0x83c   :  { %677 = vmax.xlane.f32.xlu0 %v676_v35  ;;  %680 = vmax.xlane.f32.xlu1 %v679_v36 }
 0x840   :  { %683 = vmax.xlane.f32.xlu0 %v682_v37  ;;  %686 = vmax.xlane.f32.xlu1 %v685_v38 }
 0x8bd   :  { %v672_v40 = vpop.xlane.xlu0 %671  ;;  %v666_v41 = vpop.xlane.xlu1 %665 }
 0x8be   :  { %v688_v46 = vsel %vm177_vm9, %v666_v41, %v672_v40  ;;  %v1402_v41 = vld [vmem:[%s1833_s11 + $0x18] sm:$0xff]  }
 0x8c1   :  { %v669_v42 = vpop.xlane.xlu0 %668  ;;  %v675_v43 = vpop.xlane.xlu1 %674 }
 0x8c2   :  { %v689_v47 = vsel %vm177_vm9, %v669_v42, %v675_v43  ;;  %v1403_v42 = vld [vmem:[%s1833_s11 + $0x10] sm:$0xff]   ;;  %v1404_v43 = vld [vmem:[%s1833_s11 + $0x8] sm:$0xff]  }
 0x8c5   :  { %v678_v44 = vpop.xlane.xlu0 %677  ;;  %v681_v45 = vpop.xlane.xlu1 %680 }
 0x8c6   :  { %v690_v48 = vsel %vm180_vm10, %v688_v46, %v678_v44  ;;  %v691_v49 = vsel %vm180_vm10, %v689_v47, %v681_v45  ;;  %v1405_v44 = vld [vmem:[%s1833_s11] sm:$0xff]   ;;  %v1116_v46 = vld [vmem:[%s1834_s13 + $0x8] sm:$0xff] }
 0x8c7   :  { %v1115_v45 = vld [vmem:[%s1834_s13] sm:$0xff] }
 0x8c9   :  { %v684_v50 = vpop.xlane.xlu0 %683  ;;  %v687_v51 = vpop.xlane.xlu1 %686 }
 0x8ca   :  { %v692_v52 = vsel %vm183_vm11, %v690_v48, %v684_v50  ;;  %v693_v53 = vsel %vm183_vm11, %v691_v49, %v687_v51 }
 0x8cb   :  { %1339 = vmatprep.mubr.msk.f32.mxu1 %vm187_vm12, %v692_v52 }
 0x8cc   :  { %1340 = vmatmul.mubr.msk.f32.vlgmr.msra.gmra.mxu1 %vm187_vm12, %v693_v53 }
 0x8cd   :  { %1343 = vmatpush3.msk.msra.mxu1 %vm61_vm0, %v694_v39 }
 0x8ce   :  { %1359 = vmatprep.subr.bf16.mxu1 %v1439_v8 }
 0x98c   :  { %v1341_v54 = vpop.f32.mrf.mxu1 }
 0x98d   :  { %783 = vrot.lane.b32.xlu1 %v1341_v54, %s1440_s20 }
 0x98e   :  { %v770_v55 = vpop.f32.mrf.mxu1 }
 0x98f   :  { %781 = vrot.lane.b32.xlu0 %v770_v55, %s1440_s20 }
 0x9ff   :  { %v784_v56 = vpop.permute.xlu1 %783 }
 0xa00   :  { %v788_v57 = vsub.f32 %v663_v30, %v784_v56 }
 0xa01   :  { %v782_v58 = vpop.permute.xlu0 %781 }
 0xa02   :  { %v791_v59 = vmul.f32 1.442695, %v788_v57  ;;  %v787_v60 = vsub.f32 %v662_v29, %v782_v58 }
 0xa04   :  { %1418 = vpow2.f32 %v791_v59  ;;  %v789_v61 = vmul.f32 1.442695, %v787_v60 }
 0xa06   :  { %1420 = vpow2.f32 %v789_v61 }
 0xa11   :  { %v1419_v62 = vpop.eup %1418 }
 0xa12   :  { %797 = vrot.lane.b32.xlu1 %v1419_v62, %s1440_s20  ;;  %809 = vrot.lane.b32.xlu0 %v1419_v62, %s1441_s4 }
 0xa13   :  { %v1421_v63 = vpop.eup %1420 }
 0xa16   :  { %821 = vrot.lane.b32.xlu0 %v1419_v62, %s1442_s24  ;;  %795 = vrot.lane.b32.xlu1 %v1421_v63, %s1440_s20 }
 0xa1a   :  { %807 = vrot.lane.b32.xlu0 %v1421_v63, %s1441_s4  ;;  %819 = vrot.lane.b32.xlu1 %v1421_v63, %s1442_s24 }
 0xa1e   :  { %833 = vrot.lane.b32.xlu0 %v1419_v62, %s1443_s25  ;;  %831 = vrot.lane.b32.xlu1 %v1421_v63, %s1443_s25 }
 0xa84   :  { %v798_v0 = vpop.permute.xlu1 %797  ;;  %v810_v2 = vpop.permute.xlu0 %809 }
 0xa85   :  { %v804_v3 = vsel %vm294_vm13, %v798_v0, 0.0  ;;  %v816_v4 = vsel %vm294_vm13, %v810_v2, 0.0 }
 0xa86   :  { %805 = vadd.xlane.f32.xlu0 %v804_v3  ;;  %817 = vadd.xlane.f32.xlu1 %v816_v4 }
 0xa88   :  { %v796_v5 = vpop.permute.xlu1 %795  ;;  %v822_v1 = vpop.permute.xlu0 %821 }
 0xa89   :  { %v828_v6 = vsel %vm294_vm13, %v822_v1, 0.0  ;;  %v801_v10 = vsel %vm294_vm13, %v796_v5, 0.0 }
 0xa8a   :  { %829 = vadd.xlane.f32.xlu1 %v828_v6 }
 0xa8c   :  { %v820_v7 = vpop.permute.xlu1 %819  ;;  %v808_v9 = vpop.permute.xlu0 %807 }
 0xa8d   :  { %v813_v11 = vsel %vm294_vm13, %v808_v9, 0.0  ;;  %v825_v13 = vsel %vm294_vm13, %v820_v7, 0.0 }
 0xa8e   :  { %802 = vadd.xlane.f32.xlu1 %v801_v10  ;;  %814 = vadd.xlane.f32.xlu0 %v813_v11 }
 0xa90   :  { %v834_v12 = vpop.permute.xlu0 %833  ;;  %v832_v15 = vpop.permute.xlu1 %831 }
 0xa91   :  { %v840_v14 = vsel %vm294_vm13, %v834_v12, 0.0  ;;  %v837_v16 = vsel %vm294_vm13, %v832_v15, 0.0  ;;  %v1149_v12 = vld [vmem:[%s1835_s12] sm:$0xff] }
 0xa92   :  { %826 = vadd.xlane.f32.xlu0 %v825_v13  ;;  %841 = vadd.xlane.f32.xlu1 %v840_v14 }
 0xa96   :  { %838 = vadd.xlane.f32.xlu0 %v837_v16 }
 0xb0f   :  { %v818_v17 = vpop.xlane.xlu1 %817  ;;  %v806_v18 = vpop.xlane.xlu0 %805 }
 0xb10   :  { %v844_v24 = vsel %vm177_vm9, %v806_v18, %v818_v17 }
 0xb13   :  { %v830_v19 = vpop.xlane.xlu1 %829 }
 0xb14   :  { %v846_v25 = vsel %vm180_vm10, %v844_v24, %v830_v19 }
 0xb17   :  { %v803_v20 = vpop.xlane.xlu1 %802  ;;  %v815_v21 = vpop.xlane.xlu0 %814 }
 0xb18   :  { %v843_v26 = vsel %vm177_vm9, %v803_v20, %v815_v21 }
 0xb1b   :  { %v827_v22 = vpop.xlane.xlu0 %826  ;;  %v842_v23 = vpop.xlane.xlu1 %841 }
 0xb1c   :  { %v848_v27 = vsel %vm183_vm11, %v846_v25, %v842_v23  ;;  %v845_v28 = vsel %vm180_vm10, %v843_v26, %v827_v22  ;;  %vm1161_vm10 = vcmask 195648  }
 0xb1f   :  { %v839_v29 = vpop.xlane.xlu0 %838 }
 0xb20   :  { %v847_v30 = vsel %vm183_vm11, %v845_v28, %v839_v29  ;;  %vm1838_vm11 = vcmask 64512  }
 0xb21   :  { %1422 = vrcp.f32 %v847_v30 }
 0xb22   :  { %1424 = vrcp.f32 %v848_v27 }
 0xb2e   :  { %v1423_v31 = vpop.eup %1422 }
 0xb2f   :  { %v1425_v32 = vpop.eup %1424  ;;  %1344 = vmatprep.mubr.msk.f32.mxu1 %vm187_vm12, %v1423_v31  ;;  %v1150_v31 = vld [vmem:[%s1835_s12 + $0x8] sm:$0xff]  ;;  %s1448_s12 = smov 120  }
 0xb30   :  { %1345 = vmatmul.mubr.msk.f32.vlgmr.msra.gmra.mxu1 %vm187_vm12, %v1425_v32  ;;  %vm1839_vm12 = vmmov %vm1838_vm11 }
 0xb31   :  { %1367 = vmatprep.mubr.msk.bf16.mxu1 %vm1444_vm14, %v1439_v8  ;;  %1360 = vmatpush3.bf16.msra.mxu1 %v1402_v41 }
 0xb32   :  { %1361 = vmatprep.subr.bf16.mxu1 %v1439_v8 }
 0xb35   :  { %1362 = vmatpush3.bf16.msra.mxu1 %v1403_v42 }
 0xb36   :  { %1363 = vmatprep.subr.bf16.mxu1 %v1439_v8 }
 0xb39   :  { %1364 = vmatpush3.bf16.msra.mxu1 %v1404_v43 }
 0xb3a   :  { %1365 = vmatprep.subr.bf16.mxu1 %v1439_v8 }
 0xb3d   :  { %1366 = vmatpush3.bf16.msra.mxu1 %v1405_v44 }
 0xbf0   :  { %v1346_v33 = vpop.f32.mrf.mxu1 }
 0xbf1   :  { %936 = vrot.lane.b32.xlu1 %v1346_v33, %s1440_s20 }
 0xbf2   :  { %v923_v34 = vpop.f32.mrf.mxu1 }
 0xbf3   :  { %934 = vrot.lane.b32.xlu0 %v923_v34, %s1440_s20 }
 0xbf7   :  { %1119 = vrot.lane.b32.xlu0 %v1115_v45, %s1445_s17 }
 0xc63   :  { %v937_v35 = vpop.permute.xlu1 %936 }
 0xc64   :  { %v941_v37 = vmul.f32 %v1419_v62, %v937_v35 }
 0xc65   :  { %v935_v36 = vpop.permute.xlu0 %934 }
 0xc66   :  { %v940_v38 = vmul.f32 %v1421_v63, %v935_v36 }
 0xc68   :  { %v958_v39 = vpack.c.bf16 %v941_v37, %v940_v38 }
 0xc69   :  { %v1120_v14 = vpop.permute.xlu0 %1119 }
 0xc6a   :  { %964 = vrot.lane.b32.xlu1 %v958_v39, %s1440_s20 }
 0xc6e   :  { %1121 = vrot.lane.b32.xlu1 %v1116_v46, %s1445_s17 }
 0xc72   :  { %1153 = vrot.lane.b32.xlu1 %v1149_v12, %s1446_s18 }
 0xcdc   :  { %v965_v40 = vpop.permute.xlu1 %964 }
 0xcdd   :  { %1356 = vmatmul.mubr.msk.bf16.vlgmr.msra.gmra.mxu0 %vm115_vm2, %v965_v40 }
 0xcde   :  { %1373 = vmatprep.mubr.msk.bf16.mxu0 %vm1444_vm14, %v1439_v8 }
 0xce0   :  { %v1122_v16 = vpop.permute.xlu1 %1121 }
 0xce4   :  { %v1154_v35 = vpop.permute.xlu1 %1153 }
 0xd9d   :  { %v1003_v47 = vpop.f32.mrf.mxu0 }
 0xd9e   :  { %v1010_v48 = vmin.f32 %v1003_v47, 0.0  ;;  %vm1034_vm6 = vcmp.gt.f32.partialorder %v1003_v47, 0.0 }
 0xd9f   :  { %v1357_v49 = vpop.f32.mrf.mxu0 }
 0xda0   :  { %v1014_v8 = vmul.f32 1.442695, %v1010_v48  ;;  %v1020_v54 = vmul.f32 0.5, %v1010_v48  ;;  %v1024_v55 = vmul.f32 0.33333334, %v1010_v48  ;;  %vm1012_vm0 = vcmp.lt.f32.partialorder %v1010_v48, -0.0078125 }
 0xda1   :  { %v1006_v50 = vpop.f32.mrf.mxu0 }
 0xda2   :  { %1426 = vpow2.f32 %v1014_v8  ;;  %v1011_v51 = vmin.f32 %v1006_v50, 0.0  ;;  %v1022_v58 = vmul.f32 %v1020_v54, %v1010_v48  ;;  %v1026_v59 = vadd.f32 1.0, %v1024_v55 }
 0xda3   :  { %v1358_v52 = vpop.f32.mrf.mxu0  ;;  %vm1035_vm7 = vcmp.gt.f32.partialorder %v1006_v50, 0.0 }
 0xda4   :  { %v1016_v53 = vmul.f32 1.442695, %v1011_v51  ;;  %v1021_v56 = vmul.f32 0.5, %v1011_v51  ;;  %v1025_v57 = vmul.f32 0.33333334, %v1011_v51  ;;  %v1028_v62 = vmul.f32 %v1026_v59, %v1022_v58 }
 0xda5   :  { %vm1013_vm5 = vcmp.lt.f32.partialorder %v1011_v51, -0.0078125 }
 0xda6   :  { %1428 = vpow2.f32 %v1016_v53  ;;  %v1023_v60 = vmul.f32 %v1021_v56, %v1011_v51  ;;  %v1027_v61 = vadd.f32 1.0, %v1025_v57  ;;  %v1030_v3 = vadd.f32 %v1028_v62, %v1010_v48 }
 0xda8   :  { %v1029_v2 = vmul.f32 %v1027_v61, %v1023_v60 }
 0xdaa   :  { %v1031_v6 = vadd.f32 %v1029_v2, %v1011_v51 }
 0xdaf   :  { %v1427_v63 = vpop.eup %1426 }
 0xdb0   :  { %v1278_v0 = vadd.f32 -1.0, %v1427_v63 }
 0xdb2   :  { %v1032_v5 = vsel %vm1012_vm0, %v1278_v0, %v1030_v3 }
 0xdb3   :  { %v1429_v4 = vpop.eup %1428  ;;  %v1036_v9 = vsel %vm1034_vm6, %v1003_v47, %v1032_v5 }
 0xdb4   :  { %v1279_v1 = vadd.f32 -1.0, %v1429_v4 }
 0xdb6   :  { %v1033_v7 = vsel %vm1013_vm5, %v1279_v1, %v1031_v6 }
 0xdb7   :  { %v1037_v10 = vsel %vm1035_vm7, %v1006_v50, %v1033_v7 }
 0xdb8   :  { %v1038_v11 = vpack.c.bf16 %v1037_v10, %v1036_v9 }
 0xdba   :  { %1368 = vmatmul.mubr.msk.bf16.vlgmr.msra.gmra.mxu1 %vm115_vm2, %v1038_v11 }
 0xe7a   :  { %v1108_v13 = vpop.f32.mrf.mxu1 }
 0xe7b   :  { %v1125_v17 = vmul.f32 %v1120_v14, %v1108_v13 }
 0xe7c   :  { %v1369_v15 = vpop.f32.mrf.mxu1 }
 0xe7d   :  { %v1128_v22 = vsel %vm1127_vm8, %v1125_v17, 0.0 }
 0xe7e   :  { %v1111_v18 = vpop.f32.mrf.mxu1 }
 0xe7f   :  { %v1193_v19 = vpack.c.bf16 %v1111_v18, %v1108_v13  ;;  %v1126_v20 = vmul.f32 %v1122_v16, %v1111_v18 }
 0xe80   :  { %v1370_v21 = vpop.f32.mrf.mxu1 }
 0xe81   :  { %v1129_v23 = vsel %vm1127_vm8, %v1126_v20, 0.0  ;;  %1372 = vmatpush3.bf16.msra.mxu0 %v1193_v19 }
 0xe82   :  { %v1130_v24 = vadd.f32 %v1129_v23, %v1128_v22 }
 0xe84   :  { %v1131_v25 = vrot.slane %v1130_v24, 4 }
 0xe86   :  { %v1132_v26 = vadd.f32 %v1131_v25, %v1130_v24 }
 0xe88   :  { %v1133_v27 = vrot.slane %v1132_v26, 2 }
 0xe8a   :  { %v1134_v28 = vadd.f32 %v1133_v27, %v1132_v26 }
 0xe8c   :  { %v1135_v29 = vrot.slane %v1134_v28, 1 }
 0xe8e   :  { %v1136_v30 = vadd.f32 %v1135_v29, %v1134_v28 }
 0xe90   :  { %1138 = vrot.lane.b32.xlu0 %v1136_v30, %s1447_s1 }
 0xe94   :  { %1155 = vrot.lane.b32.xlu0 %v1150_v31, %s1446_s18 }
 0xf02   :  { %v1139_v32 = vpop.permute.xlu0 %1138 }
 0xf03   :  { %v1141_v33 = vadd.f32 %v1139_v32, %v1108_v13  ;;  %v1142_v34 = vadd.f32 %v1139_v32, %v1111_v18 }
 0xf05   :  { %vm1143_vm2 = vcmp.gt.f32.partialorder %v1141_v33, 0.0  ;;  %v1145_v36 = vmul.f32 0.2, %v1141_v33  ;;  %vm1144_vm9 = vcmp.gt.f32.partialorder %v1142_v34, 0.0  ;;  %v1146_v37 = vmul.f32 0.2, %v1142_v34 }
 0xf06   :  { %v1156_v38 = vpop.permute.xlu0 %1155 }
 0xf07   :  { %v1147_v39 = vsel %vm1143_vm2, %v1141_v33, %v1145_v36  ;;  %v1148_v40 = vsel %vm1144_vm9, %v1142_v34, %v1146_v37 }
 0xf08   :  { %v1159_v41 = vadd.f32 %v1154_v35, %v1147_v39  ;;  %v1160_v42 = vadd.f32 %v1156_v38, %v1148_v40 }
 0xf0a   :  { %v1162_v43 = vsel %vm1161_vm10, %v1159_v41, -inf  ;;  %v1165_v44 = vsel %vm1161_vm10, %v1160_v42, -inf }
 0xf0b   :  { %1163 = vmax.xlane.f32.xlu1 %v1162_v43  ;;  %1166 = vmax.xlane.f32.xlu0 %v1165_v44 }
 0xf94   :  { %v1164_v45 = vpop.xlane.xlu1 %1163  ;;  %v1167_v46 = vpop.xlane.xlu0 %1166 }
 0xf95   :  { %v1168_v47 = vsub.f32 %v1159_v41, %v1164_v45  ;;  %v1169_v48 = vsub.f32 %v1160_v42, %v1167_v46 }
 0xf97   :  { %v1170_v49 = vmul.f32 1.442695, %v1168_v47  ;;  %v1172_v8 = vmul.f32 1.442695, %v1169_v48 }
 0xf99   :  { %1430 = vpow2.f32 %v1170_v49 }
 0xf9a   :  { %1432 = vpow2.f32 %v1172_v8 }
 0xfa6   :  { %v1431_v50 = vpop.eup %1430 }
 0xfa7   :  { %v1433_v51 = vpop.eup %1432  ;;  %1176 = vrot.lane.b32.xlu0 %v1431_v50, %s1448_s12 }
 0xfa8   :  { %1178 = vrot.lane.b32.xlu1 %v1433_v51, %s1448_s12 }
0x1019   :  { %v1177_v52 = vpop.permute.xlu0 %1176 }
0x101a   :  { %v1179_v53 = vpop.permute.xlu1 %1178  ;;  %v1182_v54 = vsel %vm294_vm13, %v1177_v52, 0.0 }
0x101b   :  { %v1185_v55 = vsel %vm294_vm13, %v1179_v53, 0.0  ;;  %1183 = vadd.xlane.f32.xlu1 %v1182_v54 }
0x101c   :  { %1186 = vadd.xlane.f32.xlu0 %v1185_v55 }
0x10a4   :  { %v1184_v56 = vpop.xlane.xlu1 %1183 }
0x10a5   :  { %1434 = vrcp.f32 %v1184_v56  ;;  %v1187_v57 = vpop.xlane.xlu0 %1186 }
0x10a6   :  { %1436 = vrcp.f32 %v1187_v57 }
0x10b2   :  { %v1435_v58 = vpop.eup %1434 }
0x10b3   :  { %v1437_v59 = vpop.eup %1436  ;;  %v1190_v60 = vmul.f32 %v1435_v58, %v1431_v50 }
0x10b4   :  { %v1191_v61 = vmul.f32 %v1437_v59, %v1433_v51 }
0x10b6   :  { %v1192_v62 = vpack.c.bf16 %v1191_v61, %v1190_v60 }
0x10b8   :  { %1195 = vrot.lane.b32.xlu0 %v1192_v62, %s1448_s12 }
0x112a   :  { %v1196_v63 = vpop.permute.xlu0 %1195 }
0x112b   :  { %1374 = vmatmul.mubr.msk.bf16.vlgmr.msra.gmra.mxu0 %vm294_vm13, %v1196_v63 }
0x11eb   :  { %v1234_v0 = vpop.f32.mrf.mxu0 }
0x11ec   :  { %v1241_v2 = vsel %vm1838_vm11, %v1234_v0, 0.0 }
0x11ed   :  { %1243 = vst [vmem:[%s1836_s14] sm:$0xff] %v1241_v2  ;;  %v1375_v3 = vpop.f32.mrf.mxu0 }
0x11ef   :  { %v1237_v4 = vpop.f32.mrf.mxu0 }
0x11f0   :  { %v1242_v5 = vsel %vm1839_vm12, %v1237_v4, 0.0 }
0x11f1   :  { %1244 = vst [vmem:[%s1836_s14 + $0x8] sm:$0xff] %v1242_v5  ;;  %v1376_v1 = vpop.f32.mrf.mxu0 }

</bundles_post_ra>
